<compile_context>
chip_gen: v5e
topology: v5e:2x2
jax: 0.10.0
libtpu: 0.0.40
codegen_flags: <defaults>
</compile_context>

<pallas_src>
import numpy as np

import jax
import jax.numpy as jnp
from jax.experimental import pallas as pl
from jax.experimental.pallas import tpu as pltpu

# ----------------------------- model sizes -----------------------------
BATCH = 2
IN_CH = 3
IMG = 16
FEAT_CH = 16        # stand-in for inception.fc.in_features
EMBED = 32          # embed_size
HIDDEN = 32         # hidden_size
VOCAB = 64          # vocab_size
NUM_LAYERS = 2      # num_layers
SEQ = 8             # caption length

BP = 8                          # batch padded to one sublane tile
VPAD = 128                      # vocab padded to full lane width (lane-dense out)
TP1 = SEQ + 1                   # features + caption tokens
PATCH = (IMG - 2) * (IMG - 2)   # conv output pixels per image (3x3, valid)
KDIM = IN_CH * 9                # im2col patch size

H2 = 2 * HIDDEN                 # 64  : [h0 | h1] width
H4 = 4 * HIDDEN                 # 128 : one layer's gate width
H8 = 8 * HIDDEN                 # 256 : both layers' gates, interleaved
N_ROWS = TP1 * BP               # 72  : output rows
SLAB_ROWS = (TP1 + 1) * BP      # 80  : gx slab (extra block for the last wavefront step)

assert EMBED == HIDDEN, "fused kernel reuses one gx slab width for both inputs"
assert NUM_LAYERS == 2, "wavefront fuses exactly two LSTM layers"
assert H4 == 128, "one lane tile per layer's gate block"


# ----------------------------- fused Pallas kernel -----------------------------
def fused_kernel(patches_ref, pool_ref, conv_w_ref, conv_b_ref,
                 fc_w_ref, fc_b_ref, emb_ref,
                 w_ih0_ref, bias0_ref, bias_ref,
                 w_rec_ref, lin_w_ref, lin_b_ref,
                 out_ref, gx_sc):
    # ---------------- EncoderCNN (stand-in backbone) ----------------
    # im2col conv3x3 + bias + relu for the whole batch in one MXU matmul.
    y = jnp.dot(patches_ref[...], conv_w_ref[...],
                preferred_element_type=jnp.float32) + conv_b_ref[...]
    y = jnp.maximum(y, 0.0)                                        # (B*P, F)
    # global average pool as one (BP, B*P) x (B*P, F) matmul (zero pad rows).
    pooled = jnp.dot(pool_ref[...], y, preferred_element_type=jnp.float32)
    # inception.fc -> embed_size, then relu (dropout = identity in eval).
    feat = jnp.dot(pooled, fc_w_ref[...],
                   preferred_element_type=jnp.float32) + fc_b_ref[...]
    feat = jnp.maximum(feat, 0.0)                                  # (BP, E)

    # ---------------- DecoderRNN ----------------
    # Time-batched layer-0 input->hidden preactivations for all T+1 steps.
    # Column layout is gate-interleaved over both layers:
    #   [i0 i1 f0 f1 g0 g1 o0 o1], 32 lanes each.  Layer-1 sub-bands hold the
    # layer-1 bias (zero in row-block 0 so the warm-up cell yields h1=c1=0).
    # Three full-width (256-lane) unmasked stores; no stores inside the loop.
    w_ih0 = w_ih0_ref[...]
    gx_sc[0:BP, :] = jnp.dot(feat, w_ih0,
                             preferred_element_type=jnp.float32) + bias0_ref[...]
    gx_sc[BP:TP1 * BP, :] = jnp.dot(emb_ref[...], w_ih0,
                                    preferred_element_type=jnp.float32) + bias_ref[...]
    # Extra block: finite filler for the last wavefront step's (discarded) layer-0 half.
    gx_sc[TP1 * BP:, :] = jnp.zeros((BP, H8), jnp.float32) + bias_ref[...]

    # Hoisted constants for the single-tanh gate pass:
    #   sigmoid(x) = 0.5 * tanh(0.5 * x) + 0.5  on the i/f/o bands, tanh on g.
    lane = jax.lax.broadcasted_iota(jnp.int32, (BP, H8), 1)
    g_band = jnp.logical_and(lane >= 4 * HIDDEN, lane < 6 * HIDDEN)   # g0|g1
    halfm = jnp.where(g_band, 1.0, 0.5)
    halfa = jnp.where(g_band, 0.0, 0.5)

    def cell(gates, c_prev):
        # gates: (BP, 8H) interleaved [i0 i1 f0 f1 g0 g1 o0 o1]; c_prev: (BP, 2H)=[c0|c1]
        t = jnp.tanh(gates * halfm)          # ONE EUP pass over all gates
        act = t * halfm + halfa              # cheap VPU post-fix
        i = act[:, 0 * H2:1 * H2]
        f = act[:, 1 * H2:2 * H2]
        g = act[:, 2 * H2:3 * H2]
        o = act[:, 3 * H2:4 * H2]
        c = f * c_prev + i * g               # (BP, 2H) = [c0 | c1]
        h = o * jnp.tanh(c)                  # (BP, 2H) = [h0 | h1]
        return h, c

    w_rec = w_rec_ref[...]                   # (2H, 8H) bf16 stacked recurrent weight

    # Warm-up: layer-0 timestep 0 (recurrent term vanishes, h0_{-1}=0); the
    # layer-1 half of row-block 0 is zero, so h1 and c1 come out exactly zero.
    h, c = cell(gx_sc[0:BP, :], jnp.zeros((BP, H2), jnp.float32))

    # Wavefront: step k computes layer-1 timestep k and layer-0 timestep k+1
    # from ONE (8,64)x(64,256) bf16 matmul with LHS = [h0_k | h1_{k-1}].
    h_steps = []
    for k in range(TP1):                     # static, unrolled
        rec = jnp.dot(h.astype(jnp.bfloat16), w_rec,
                      preferred_element_type=jnp.float32)          # (BP, 8H)
        r0 = (k + 1) * BP
        h, c = cell(rec + gx_sc[r0:r0 + BP, :], c)
        h_steps.append(h)                    # columns [H:2H] = layer-1 h at timestep k

    hiddens = jnp.concatenate(h_steps, axis=0)                      # (TP1*BP, 2H)
    # lin_w has zero rows for the layer-0 half, so this projects only layer-1 h.
    # Lane-dense (72, 128) store: the only HBM write of the kernel.
    out_ref[...] = (jnp.dot(hiddens, lin_w_ref[...],
                            preferred_element_type=jnp.float32)
                    + lin_b_ref[...])


# ----------------------------- glue -----------------------------
def extract_patches(x):
    """NCHW image -> (B, Ho*Wo, C*9) im2col patches (3x3, stride 1, valid)."""
    nb, c, h, w = x.shape
    ho, wo = h - 2, w - 2
    cols = []
    for ci in range(c):
        for dy in range(3):
            for dx in range(3):
                cols.append(x[:, ci, dy:dy + ho, dx:dx + wo].reshape(nb, ho * wo))
    return jnp.stack(cols, axis=-1)   # k index = ci*9 + dy*3 + dx


def gate_interleave_perm():
    """Column permutation [L0_ifgo | L1_ifgo] -> [i0 i1 f0 f1 g0 g1 o0 o1]."""
    return np.concatenate([
        np.arange(l * H4 + g * HIDDEN, l * H4 + (g + 1) * HIDDEN)
        for g in range(4) for l in range(2)])


def init_params(key):
    def norm(k, shape, scale=0.1):
        return scale * jax.random.normal(k, shape, dtype=jnp.float32)

    keys = jax.random.split(key, 7 + NUM_LAYERS)
    ki = iter(keys)
    params = {
        "conv_w": norm(next(ki), (FEAT_CH, IN_CH, 3, 3)),
        "conv_b": norm(next(ki), (FEAT_CH,)),
        "fc_w": norm(next(ki), (EMBED, FEAT_CH)),     # inception.fc (trainable)
        "fc_b": norm(next(ki), (EMBED,)),
        "embed": norm(next(ki), (VOCAB, EMBED)),
        "lstm": [],
        "lin_w": None,
        "lin_b": None,
    }
    for layer in range(NUM_LAYERS):
        in_dim = EMBED if layer == 0 else HIDDEN
        kk = jax.random.split(next(ki), 4)
        params["lstm"].append({
            "w_ih": norm(kk[0], (4 * HIDDEN, in_dim)),
            "w_hh": norm(kk[1], (4 * HIDDEN, HIDDEN)),
            "b_ih": norm(kk[2], (4 * HIDDEN,)),
            "b_hh": norm(kk[3], (4 * HIDDEN,)),
        })
    params["lin_w"] = norm(next(ki), (VOCAB, HIDDEN))
    params["lin_b"] = norm(next(ki), (VOCAB,))
    return params


def cnn_to_rnn_forward(params, images, captions):
    # --- glue: im2col, pooling matrix, embedding lookup, padding (plain XLA) ---
    patches = extract_patches(images).reshape(BATCH * PATCH, KDIM)   # (B*P, K)
    pool = jnp.zeros((BP, BATCH * PATCH), jnp.float32)
    pool = pool.at[:BATCH].set(
        jnp.repeat(jnp.eye(BATCH, dtype=jnp.float32), PATCH, axis=1) / PATCH)

    emb = jnp.take(params["embed"], captions, axis=0)                # (T, B, E)
    emb_pad = jnp.zeros((SEQ, BP, EMBED), jnp.float32).at[:, :BATCH].set(emb)
    emb_flat = emb_pad.reshape(SEQ * BP, EMBED)                      # (T*BP, E)

    conv_w2d = params["conv_w"].reshape(FEAT_CH, -1).T               # (K, F)
    conv_b2d = params["conv_b"][None, :]
    fc_w = params["fc_w"].T                                          # (F, E)
    fc_b = params["fc_b"][None, :]

    l0, l1 = params["lstm"]
    perm = gate_interleave_perm()

    # Combined biases (PyTorch adds b_ih + b_hh), gate-interleaved over layers.
    b0 = l0["b_ih"] + l0["b_hh"]                                     # (4H,)
    b1 = l1["b_ih"] + l1["b_hh"]                                     # (4H,)
    bias_rest = jnp.concatenate([b0, b1])[perm][None, :]             # (1, 8H)
    bias_row0 = jnp.concatenate([b0, jnp.zeros_like(b1)])[perm][None, :]

    # Layer-0 input->hidden weight widened to the interleaved 256-column space
    # (layer-1 sub-bands are zero).
    w_ih0_wide = jnp.zeros((EMBED, H8), jnp.float32)
    w_ih0_wide = w_ih0_wide.at[:, :H4].set(l0["w_ih"].T)
    w_ih0_wide = w_ih0_wide[:, perm]

    # Block-structured stacked recurrent weight for the wavefront matmul:
    #   [[ Whh0  Wih1 ],
    #    [   0   Whh1 ]]   -> gate-interleaved columns, bf16 operands.
    w_rec = jnp.zeros((H2, H8), jnp.float32)
    w_rec = w_rec.at[:HIDDEN, :H4].set(l0["w_hh"].T)                 # Whh0
    w_rec = w_rec.at[:HIDDEN, H4:].set(l1["w_ih"].T)                 # Wih1
    w_rec = w_rec.at[HIDDEN:, H4:].set(l1["w_hh"].T)                 # Whh1
    w_rec = w_rec[:, perm].astype(jnp.bfloat16)

    # Vocab head: rows 0:H are zero so only the layer-1 half of [h0|h1] projects.
    lin_w_wide = jnp.zeros((H2, VPAD), jnp.float32)
    lin_w_wide = lin_w_wide.at[HIDDEN:, :VOCAB].set(params["lin_w"].T)
    lin_b = jnp.zeros((1, VPAD), jnp.float32).at[:, :VOCAB].set(
        params["lin_b"][None, :])

    inputs = [patches, pool, conv_w2d, conv_b2d, fc_w, fc_b, emb_flat,
              w_ih0_wide, bias_row0, bias_rest, w_rec, lin_w_wide, lin_b]

    out = pl.pallas_call(
        fused_kernel,
        out_shape=jax.ShapeDtypeStruct((N_ROWS, VPAD), jnp.float32),
        in_specs=[pl.BlockSpec(memory_space=pltpu.MemorySpace.VMEM)
                  for _ in inputs],
        out_specs=pl.BlockSpec(memory_space=pltpu.MemorySpace.VMEM),
        scratch_shapes=[
            pltpu.VMEM((SLAB_ROWS, H8), jnp.float32),   # time-batched gx slab
        ],
    )(*inputs)

    # drop batch padding and vocab lane padding
    return out.reshape(TP1, BP, VPAD)[:, :BATCH, :VOCAB]             # (T+1, B, V)


if __name__ == "__main__":
    key = jax.random.PRNGKey(0)
    pkey, ikey, ckey = jax.random.split(key, 3)
    params = init_params(pkey)
    images = jax.random.normal(ikey, (BATCH, IN_CH, IMG, IMG), dtype=jnp.float32)
    captions = jax.random.randint(ckey, (SEQ, BATCH), 0, VOCAB, dtype=jnp.int32)

    out = jax.jit(cnn_to_rnn_forward)(params, images, captions)
    out = jax.block_until_ready(out)
    assert out.shape == (SEQ + 1, BATCH, VOCAB), out.shape
    assert out.dtype == jnp.float32
    print("KERNEL_OK")
</pallas_src>

<mosaic_0001>
module attributes {stable_mosaic.version = 11 : i64} {
  func.func @fused_kernel(%arg0: memref<392x27xf32, #tpu.memory_space<vmem>>, %arg1: memref<8x392xf32, #tpu.memory_space<vmem>>, %arg2: memref<27x16xf32, #tpu.memory_space<vmem>>, %arg3: memref<1x16xf32, #tpu.memory_space<vmem>>, %arg4: memref<16x32xf32, #tpu.memory_space<vmem>>, %arg5: memref<1x32xf32, #tpu.memory_space<vmem>>, %arg6: memref<64x32xf32, #tpu.memory_space<vmem>>, %arg7: memref<32x256xf32, #tpu.memory_space<vmem>>, %arg8: memref<1x256xf32, #tpu.memory_space<vmem>>, %arg9: memref<1x256xf32, #tpu.memory_space<vmem>>, %arg10: memref<64x256xbf16, #tpu.memory_space<vmem>>, %arg11: memref<64x128xf32, #tpu.memory_space<vmem>>, %arg12: memref<1x128xf32, #tpu.memory_space<vmem>>, %arg13: memref<72x128xf32, #tpu.memory_space<vmem>>, %arg14: memref<80x256xf32, #tpu.memory_space<vmem>>) attributes {dimension_semantics = [], scalar_prefetch = 0 : i64, scratch_operands = 1 : i64, tpu.core_type = #tpu.core_type<tc>} {
    %c0 = arith.constant 0 : index
    %c0_0 = arith.constant 0 : index
    %0 = vector.load %arg0[%c0, %c0_0] : memref<392x27xf32, #tpu.memory_space<vmem>>, vector<392x27xf32>
    %c0_1 = arith.constant 0 : index
    %c0_2 = arith.constant 0 : index
    %1 = vector.load %arg2[%c0_1, %c0_2] : memref<27x16xf32, #tpu.memory_space<vmem>>, vector<27x16xf32>
    %cst = arith.constant dense<0.000000e+00> : vector<392x16xf32>
    %2 = tpu.matmul %0, %1, %cst {dimension_numbers = #tpu.dot_dimension_numbers<[1], [0], [0], [1], [0, 0, 1, 1], [], []>} : vector<392x27xf32>, vector<27x16xf32>, vector<392x16xf32> -> vector<392x16xf32>
    %c0_3 = arith.constant 0 : index
    %c0_4 = arith.constant 0 : index
    %3 = vector.load %arg3[%c0_3, %c0_4] : memref<1x16xf32, #tpu.memory_space<vmem>>, vector<1x16xf32>
    %4 = vector.broadcast %3 : vector<1x16xf32> to vector<392x16xf32>
    %5 = arith.addf %2, %4 : vector<392x16xf32>
    %cst_5 = arith.constant 0.000000e+00 : f32
    %6 = vector.broadcast %cst_5 : f32 to vector<392x16xf32>
    %7 = arith.maximumf %5, %6 : vector<392x16xf32>
    %c0_6 = arith.constant 0 : index
    %c0_7 = arith.constant 0 : index
    %8 = vector.load %arg1[%c0_6, %c0_7] : memref<8x392xf32, #tpu.memory_space<vmem>>, vector<8x392xf32>
    %cst_8 = arith.constant dense<0.000000e+00> : vector<8x16xf32>
    %9 = tpu.matmul %8, %7, %cst_8 {dimension_numbers = #tpu.dot_dimension_numbers<[1], [0], [0], [1], [0, 0, 1, 1], [], []>} : vector<8x392xf32>, vector<392x16xf32>, vector<8x16xf32> -> vector<8x16xf32>
    %c0_9 = arith.constant 0 : index
    %c0_10 = arith.constant 0 : index
    %10 = vector.load %arg4[%c0_9, %c0_10] : memref<16x32xf32, #tpu.memory_space<vmem>>, vector<16x32xf32>
    %cst_11 = arith.constant dense<0.000000e+00> : vector<8x32xf32>
    %11 = tpu.matmul %9, %10, %cst_11 {dimension_numbers = #tpu.dot_dimension_numbers<[1], [0], [0], [1], [0, 0, 1, 1], [], []>} : vector<8x16xf32>, vector<16x32xf32>, vector<8x32xf32> -> vector<8x32xf32>
    %c0_12 = arith.constant 0 : index
    %c0_13 = arith.constant 0 : index
    %12 = vector.load %arg5[%c0_12, %c0_13] : memref<1x32xf32, #tpu.memory_space<vmem>>, vector<1x32xf32>
    %13 = vector.broadcast %12 : vector<1x32xf32> to vector<8x32xf32>
    %14 = arith.addf %11, %13 : vector<8x32xf32>
    %cst_14 = arith.constant 0.000000e+00 : f32
    %15 = vector.broadcast %cst_14 : f32 to vector<8x32xf32>
    %16 = arith.maximumf %14, %15 : vector<8x32xf32>
    %c0_15 = arith.constant 0 : index
    %c0_16 = arith.constant 0 : index
    %17 = vector.load %arg7[%c0_15, %c0_16] : memref<32x256xf32, #tpu.memory_space<vmem>>, vector<32x256xf32>
    %cst_17 = arith.constant dense<0.000000e+00> : vector<8x256xf32>
    %18 = tpu.matmul %16, %17, %cst_17 {dimension_numbers = #tpu.dot_dimension_numbers<[1], [0], [0], [1], [0, 0, 1, 1], [], []>} : vector<8x32xf32>, vector<32x256xf32>, vector<8x256xf32> -> vector<8x256xf32>
    %c0_18 = arith.constant 0 : index
    %c0_19 = arith.constant 0 : index
    %19 = vector.load %arg8[%c0_18, %c0_19] : memref<1x256xf32, #tpu.memory_space<vmem>>, vector<1x256xf32>
    %20 = vector.broadcast %19 : vector<1x256xf32> to vector<8x256xf32>
    %21 = arith.addf %18, %20 : vector<8x256xf32>
    %c0_20 = arith.constant 0 : index
    %c0_21 = arith.constant 0 : index
    %22 = vector.load %arg14[%c0_20, %c0_21] : memref<80x256xf32, #tpu.memory_space<vmem>>, vector<8x256xf32>
    tpu.vector_store %arg14[%c0_20, %c0_21], %21 {strides = array<i32>} : memref<80x256xf32, #tpu.memory_space<vmem>>, vector<8x256xf32>,
    %c0_22 = arith.constant 0 : index
    %c0_23 = arith.constant 0 : index
    %23 = vector.load %arg6[%c0_22, %c0_23] : memref<64x32xf32, #tpu.memory_space<vmem>>, vector<64x32xf32>
    %cst_24 = arith.constant dense<0.000000e+00> : vector<64x256xf32>
    %24 = tpu.matmul %23, %17, %cst_24 {dimension_numbers = #tpu.dot_dimension_numbers<[1], [0], [0], [1], [0, 0, 1, 1], [], []>} : vector<64x32xf32>, vector<32x256xf32>, vector<64x256xf32> -> vector<64x256xf32>
    %c0_25 = arith.constant 0 : index
    %c0_26 = arith.constant 0 : index
    %25 = vector.load %arg9[%c0_25, %c0_26] : memref<1x256xf32, #tpu.memory_space<vmem>>, vector<1x256xf32>
    %26 = vector.broadcast %25 : vector<1x256xf32> to vector<64x256xf32>
    %27 = arith.addf %24, %26 : vector<64x256xf32>
    %c8 = arith.constant 8 : index
    %c0_27 = arith.constant 0 : index
    %28 = vector.load %arg14[%c8, %c0_27] : memref<80x256xf32, #tpu.memory_space<vmem>>, vector<64x256xf32>
    tpu.vector_store %arg14[%c8, %c0_27], %27 {strides = array<i32>} : memref<80x256xf32, #tpu.memory_space<vmem>>, vector<64x256xf32>,
    %cst_28 = arith.constant 0.000000e+00 : f32
    %29 = vector.broadcast %cst_28 : f32 to vector<8x256xf32>
    %c0_29 = arith.constant 0 : index
    %c0_30 = arith.constant 0 : index
    %30 = vector.load %arg9[%c0_29, %c0_30] : memref<1x256xf32, #tpu.memory_space<vmem>>, vector<1x256xf32>
    %31 = vector.broadcast %30 : vector<1x256xf32> to vector<8x256xf32>
    %32 = arith.addf %29, %31 : vector<8x256xf32>
    %c72 = arith.constant 72 : index
    %c0_31 = arith.constant 0 : index
    %33 = vector.load %arg14[%c72, %c0_31] : memref<80x256xf32, #tpu.memory_space<vmem>>, vector<8x256xf32>
    tpu.vector_store %arg14[%c72, %c0_31], %32 {strides = array<i32>} : memref<80x256xf32, #tpu.memory_space<vmem>>, vector<8x256xf32>,
    %34 = tpu.iota {dimensions = array<i32: 1>} : vector<8x256xi32>
    %c128_i32 = arith.constant 128 : i32
    %35 = vector.broadcast %c128_i32 : i32 to vector<8x256xi32>
    %36 = arith.cmpi sge, %34, %35 : vector<8x256xi32>
    %c192_i32 = arith.constant 192 : i32
    %37 = vector.broadcast %c192_i32 : i32 to vector<8x256xi32>
    %38 = arith.cmpi slt, %34, %37 : vector<8x256xi32>
    %39 = arith.andi %36, %38 : vector<8x256xi1>
    %cst_32 = arith.constant 1.000000e+00 : f32
    %cst_33 = arith.constant 5.000000e-01 : f32
    %40 = vector.broadcast %cst_32 : f32 to vector<8x256xf32>
    %41 = vector.broadcast %cst_33 : f32 to vector<8x256xf32>
    %42 = arith.select %39, %40, %41 : vector<8x256xi1>, vector<8x256xf32>
    %cst_34 = arith.constant 0.000000e+00 : f32
    %cst_35 = arith.constant 5.000000e-01 : f32
    %43 = vector.broadcast %cst_34 : f32 to vector<8x256xf32>
    %44 = vector.broadcast %cst_35 : f32 to vector<8x256xf32>
    %45 = arith.select %39, %43, %44 : vector<8x256xi1>, vector<8x256xf32>
    %c0_36 = arith.constant 0 : index
    %c0_37 = arith.constant 0 : index
    %46 = vector.load %arg10[%c0_36, %c0_37] : memref<64x256xbf16, #tpu.memory_space<vmem>>, vector<64x256xbf16>
    %c0_38 = arith.constant 0 : index
    %c0_39 = arith.constant 0 : index
    %47 = vector.load %arg14[%c0_38, %c0_39] : memref<80x256xf32, #tpu.memory_space<vmem>>, vector<8x256xf32>
    %cst_40 = arith.constant 0.000000e+00 : f32
    %48 = vector.broadcast %cst_40 : f32 to vector<8x64xf32>
    %49 = arith.mulf %47, %42 : vector<8x256xf32>
    %50 = math.tanh %49 : vector<8x256xf32>
    %51 = arith.mulf %50, %42 : vector<8x256xf32>
    %52 = arith.addf %51, %45 : vector<8x256xf32>
    %53 = vector.extract_strided_slice %52 {offsets = [0, 0], sizes = [8, 64], strides = [1, 1]} : vector<8x256xf32> to vector<8x64xf32>
    %54 = vector.extract_strided_slice %52 {offsets = [0, 64], sizes = [8, 64], strides = [1, 1]} : vector<8x256xf32> to vector<8x64xf32>
    %55 = vector.extract_strided_slice %52 {offsets = [0, 128], sizes = [8, 64], strides = [1, 1]} : vector<8x256xf32> to vector<8x64xf32>
    %56 = vector.extract_strided_slice %52 {offsets = [0, 192], sizes = [8, 64], strides = [1, 1]} : vector<8x256xf32> to vector<8x64xf32>
    %57 = arith.mulf %54, %48 : vector<8x64xf32>
    %58 = arith.mulf %53, %55 : vector<8x64xf32>
    %59 = arith.addf %57, %58 : vector<8x64xf32>
    %60 = math.tanh %59 : vector<8x64xf32>
    %61 = arith.mulf %56, %60 : vector<8x64xf32>
    %62 = arith.truncf %61 : vector<8x64xf32> to vector<8x64xbf16>
    %cst_41 = arith.constant dense<0.000000e+00> : vector<8x256xf32>
    %63 = tpu.matmul %62, %46, %cst_41 {dimension_numbers = #tpu.dot_dimension_numbers<[1], [0], [0], [1], [0, 0, 1, 1], [], []>} : vector<8x64xbf16>, vector<64x256xbf16>, vector<8x256xf32> -> vector<8x256xf32>
    %c8_42 = arith.constant 8 : index
    %c0_43 = arith.constant 0 : index
    %64 = vector.load %arg14[%c8_42, %c0_43] : memref<80x256xf32, #tpu.memory_space<vmem>>, vector<8x256xf32>
    %65 = arith.addf %63, %64 : vector<8x256xf32>
    %66 = arith.mulf %65, %42 : vector<8x256xf32>
    %67 = math.tanh %66 : vector<8x256xf32>
    %68 = arith.mulf %67, %42 : vector<8x256xf32>
    %69 = arith.addf %68, %45 : vector<8x256xf32>
    %70 = vector.extract_strided_slice %69 {offsets = [0, 0], sizes = [8, 64], strides = [1, 1]} : vector<8x256xf32> to vector<8x64xf32>
    %71 = vector.extract_strided_slice %69 {offsets = [0, 64], sizes = [8, 64], strides = [1, 1]} : vector<8x256xf32> to vector<8x64xf32>
    %72 = vector.extract_strided_slice %69 {offsets = [0, 128], sizes = [8, 64], strides = [1, 1]} : vector<8x256xf32> to vector<8x64xf32>
    %73 = vector.extract_strided_slice %69 {offsets = [0, 192], sizes = [8, 64], strides = [1, 1]} : vector<8x256xf32> to vector<8x64xf32>
    %74 = arith.mulf %71, %59 : vector<8x64xf32>
    %75 = arith.mulf %70, %72 : vector<8x64xf32>
    %76 = arith.addf %74, %75 : vector<8x64xf32>
    %77 = math.tanh %76 : vector<8x64xf32>
    %78 = arith.mulf %73, %77 : vector<8x64xf32>
    %79 = arith.truncf %78 : vector<8x64xf32> to vector<8x64xbf16>
    %cst_44 = arith.constant dense<0.000000e+00> : vector<8x256xf32>
    %80 = tpu.matmul %79, %46, %cst_44 {dimension_numbers = #tpu.dot_dimension_numbers<[1], [0], [0], [1], [0, 0, 1, 1], [], []>} : vector<8x64xbf16>, vector<64x256xbf16>, vector<8x256xf32> -> vector<8x256xf32>
    %c16 = arith.constant 16 : index
    %c0_45 = arith.constant 0 : index
    %81 = vector.load %arg14[%c16, %c0_45] : memref<80x256xf32, #tpu.memory_space<vmem>>, vector<8x256xf32>
    %82 = arith.addf %80, %81 : vector<8x256xf32>
    %83 = arith.mulf %82, %42 : vector<8x256xf32>
    %84 = math.tanh %83 : vector<8x256xf32>
    %85 = arith.mulf %84, %42 : vector<8x256xf32>
    %86 = arith.addf %85, %45 : vector<8x256xf32>
    %87 = vector.extract_strided_slice %86 {offsets = [0, 0], sizes = [8, 64], strides = [1, 1]} : vector<8x256xf32> to vector<8x64xf32>
    %88 = vector.extract_strided_slice %86 {offsets = [0, 64], sizes = [8, 64], strides = [1, 1]} : vector<8x256xf32> to vector<8x64xf32>
    %89 = vector.extract_strided_slice %86 {offsets = [0, 128], sizes = [8, 64], strides = [1, 1]} : vector<8x256xf32> to vector<8x64xf32>
    %90 = vector.extract_strided_slice %86 {offsets = [0, 192], sizes = [8, 64], strides = [1, 1]} : vector<8x256xf32> to vector<8x64xf32>
    %91 = arith.mulf %88, %76 : vector<8x64xf32>
    %92 = arith.mulf %87, %89 : vector<8x64xf32>
    %93 = arith.addf %91, %92 : vector<8x64xf32>
    %94 = math.tanh %93 : vector<8x64xf32>
    %95 = arith.mulf %90, %94 : vector<8x64xf32>
    %96 = arith.truncf %95 : vector<8x64xf32> to vector<8x64xbf16>
    %cst_46 = arith.constant dense<0.000000e+00> : vector<8x256xf32>
    %97 = tpu.matmul %96, %46, %cst_46 {dimension_numbers = #tpu.dot_dimension_numbers<[1], [0], [0], [1], [0, 0, 1, 1], [], []>} : vector<8x64xbf16>, vector<64x256xbf16>, vector<8x256xf32> -> vector<8x256xf32>
    %c24 = arith.constant 24 : index
    %c0_47 = arith.constant 0 : index
    %98 = vector.load %arg14[%c24, %c0_47] : memref<80x256xf32, #tpu.memory_space<vmem>>, vector<8x256xf32>
    %99 = arith.addf %97, %98 : vector<8x256xf32>
    %100 = arith.mulf %99, %42 : vector<8x256xf32>
    %101 = math.tanh %100 : vector<8x256xf32>
    %102 = arith.mulf %101, %42 : vector<8x256xf32>
    %103 = arith.addf %102, %45 : vector<8x256xf32>
    %104 = vector.extract_strided_slice %103 {offsets = [0, 0], sizes = [8, 64], strides = [1, 1]} : vector<8x256xf32> to vector<8x64xf32>
    %105 = vector.extract_strided_slice %103 {offsets = [0, 64], sizes = [8, 64], strides = [1, 1]} : vector<8x256xf32> to vector<8x64xf32>
    %106 = vector.extract_strided_slice %103 {offsets = [0, 128], sizes = [8, 64], strides = [1, 1]} : vector<8x256xf32> to vector<8x64xf32>
    %107 = vector.extract_strided_slice %103 {offsets = [0, 192], sizes = [8, 64], strides = [1, 1]} : vector<8x256xf32> to vector<8x64xf32>
    %108 = arith.mulf %105, %93 : vector<8x64xf32>
    %109 = arith.mulf %104, %106 : vector<8x64xf32>
    %110 = arith.addf %108, %109 : vector<8x64xf32>
    %111 = math.tanh %110 : vector<8x64xf32>
    %112 = arith.mulf %107, %111 : vector<8x64xf32>
    %113 = arith.truncf %112 : vector<8x64xf32> to vector<8x64xbf16>
    %cst_48 = arith.constant dense<0.000000e+00> : vector<8x256xf32>
    %114 = tpu.matmul %113, %46, %cst_48 {dimension_numbers = #tpu.dot_dimension_numbers<[1], [0], [0], [1], [0, 0, 1, 1], [], []>} : vector<8x64xbf16>, vector<64x256xbf16>, vector<8x256xf32> -> vector<8x256xf32>
    %c32 = arith.constant 32 : index
    %c0_49 = arith.constant 0 : index
    %115 = vector.load %arg14[%c32, %c0_49] : memref<80x256xf32, #tpu.memory_space<vmem>>, vector<8x256xf32>
    %116 = arith.addf %114, %115 : vector<8x256xf32>
    %117 = arith.mulf %116, %42 : vector<8x256xf32>
    %118 = math.tanh %117 : vector<8x256xf32>
    %119 = arith.mulf %118, %42 : vector<8x256xf32>
    %120 = arith.addf %119, %45 : vector<8x256xf32>
    %121 = vector.extract_strided_slice %120 {offsets = [0, 0], sizes = [8, 64], strides = [1, 1]} : vector<8x256xf32> to vector<8x64xf32>
    %122 = vector.extract_strided_slice %120 {offsets = [0, 64], sizes = [8, 64], strides = [1, 1]} : vector<8x256xf32> to vector<8x64xf32>
    %123 = vector.extract_strided_slice %120 {offsets = [0, 128], sizes = [8, 64], strides = [1, 1]} : vector<8x256xf32> to vector<8x64xf32>
    %124 = vector.extract_strided_slice %120 {offsets = [0, 192], sizes = [8, 64], strides = [1, 1]} : vector<8x256xf32> to vector<8x64xf32>
    %125 = arith.mulf %122, %110 : vector<8x64xf32>
    %126 = arith.mulf %121, %123 : vector<8x64xf32>
    %127 = arith.addf %125, %126 : vector<8x64xf32>
    %128 = math.tanh %127 : vector<8x64xf32>
    %129 = arith.mulf %124, %128 : vector<8x64xf32>
    %130 = arith.truncf %129 : vector<8x64xf32> to vector<8x64xbf16>
    %cst_50 = arith.constant dense<0.000000e+00> : vector<8x256xf32>
    %131 = tpu.matmul %130, %46, %cst_50 {dimension_numbers = #tpu.dot_dimension_numbers<[1], [0], [0], [1], [0, 0, 1, 1], [], []>} : vector<8x64xbf16>, vector<64x256xbf16>, vector<8x256xf32> -> vector<8x256xf32>
    %c40 = arith.constant 40 : index
    %c0_51 = arith.constant 0 : index
    %132 = vector.load %arg14[%c40, %c0_51] : memref<80x256xf32, #tpu.memory_space<vmem>>, vector<8x256xf32>
    %133 = arith.addf %131, %132 : vector<8x256xf32>
    %134 = arith.mulf %133, %42 : vector<8x256xf32>
    %135 = math.tanh %134 : vector<8x256xf32>
    %136 = arith.mulf %135, %42 : vector<8x256xf32>
    %137 = arith.addf %136, %45 : vector<8x256xf32>
    %138 = vector.extract_strided_slice %137 {offsets = [0, 0], sizes = [8, 64], strides = [1, 1]} : vector<8x256xf32> to vector<8x64xf32>
    %139 = vector.extract_strided_slice %137 {offsets = [0, 64], sizes = [8, 64], strides = [1, 1]} : vector<8x256xf32> to vector<8x64xf32>
    %140 = vector.extract_strided_slice %137 {offsets = [0, 128], sizes = [8, 64], strides = [1, 1]} : vector<8x256xf32> to vector<8x64xf32>
    %141 = vector.extract_strided_slice %137 {offsets = [0, 192], sizes = [8, 64], strides = [1, 1]} : vector<8x256xf32> to vector<8x64xf32>
    %142 = arith.mulf %139, %127 : vector<8x64xf32>
    %143 = arith.mulf %138, %140 : vector<8x64xf32>
    %144 = arith.addf %142, %143 : vector<8x64xf32>
    %145 = math.tanh %144 : vector<8x64xf32>
    %146 = arith.mulf %141, %145 : vector<8x64xf32>
    %147 = arith.truncf %146 : vector<8x64xf32> to vector<8x64xbf16>
    %cst_52 = arith.constant dense<0.000000e+00> : vector<8x256xf32>
    %148 = tpu.matmul %147, %46, %cst_52 {dimension_numbers = #tpu.dot_dimension_numbers<[1], [0], [0], [1], [0, 0, 1, 1], [], []>} : vector<8x64xbf16>, vector<64x256xbf16>, vector<8x256xf32> -> vector<8x256xf32>
    %c48 = arith.constant 48 : index
    %c0_53 = arith.constant 0 : index
    %149 = vector.load %arg14[%c48, %c0_53] : memref<80x256xf32, #tpu.memory_space<vmem>>, vector<8x256xf32>
    %150 = arith.addf %148, %149 : vector<8x256xf32>
    %151 = arith.mulf %150, %42 : vector<8x256xf32>
    %152 = math.tanh %151 : vector<8x256xf32>
    %153 = arith.mulf %152, %42 : vector<8x256xf32>
    %154 = arith.addf %153, %45 : vector<8x256xf32>
    %155 = vector.extract_strided_slice %154 {offsets = [0, 0], sizes = [8, 64], strides = [1, 1]} : vector<8x256xf32> to vector<8x64xf32>
    %156 = vector.extract_strided_slice %154 {offsets = [0, 64], sizes = [8, 64], strides = [1, 1]} : vector<8x256xf32> to vector<8x64xf32>
    %157 = vector.extract_strided_slice %154 {offsets = [0, 128], sizes = [8, 64], strides = [1, 1]} : vector<8x256xf32> to vector<8x64xf32>
    %158 = vector.extract_strided_slice %154 {offsets = [0, 192], sizes = [8, 64], strides = [1, 1]} : vector<8x256xf32> to vector<8x64xf32>
    %159 = arith.mulf %156, %144 : vector<8x64xf32>
    %160 = arith.mulf %155, %157 : vector<8x64xf32>
    %161 = arith.addf %159, %160 : vector<8x64xf32>
    %162 = math.tanh %161 : vector<8x64xf32>
    %163 = arith.mulf %158, %162 : vector<8x64xf32>
    %164 = arith.truncf %163 : vector<8x64xf32> to vector<8x64xbf16>
    %cst_54 = arith.constant dense<0.000000e+00> : vector<8x256xf32>
    %165 = tpu.matmul %164, %46, %cst_54 {dimension_numbers = #tpu.dot_dimension_numbers<[1], [0], [0], [1], [0, 0, 1, 1], [], []>} : vector<8x64xbf16>, vector<64x256xbf16>, vector<8x256xf32> -> vector<8x256xf32>
    %c56 = arith.constant 56 : index
    %c0_55 = arith.constant 0 : index
    %166 = vector.load %arg14[%c56, %c0_55] : memref<80x256xf32, #tpu.memory_space<vmem>>, vector<8x256xf32>
    %167 = arith.addf %165, %166 : vector<8x256xf32>
    %168 = arith.mulf %167, %42 : vector<8x256xf32>
    %169 = math.tanh %168 : vector<8x256xf32>
    %170 = arith.mulf %169, %42 : vector<8x256xf32>
    %171 = arith.addf %170, %45 : vector<8x256xf32>
    %172 = vector.extract_strided_slice %171 {offsets = [0, 0], sizes = [8, 64], strides = [1, 1]} : vector<8x256xf32> to vector<8x64xf32>
    %173 = vector.extract_strided_slice %171 {offsets = [0, 64], sizes = [8, 64], strides = [1, 1]} : vector<8x256xf32> to vector<8x64xf32>
    %174 = vector.extract_strided_slice %171 {offsets = [0, 128], sizes = [8, 64], strides = [1, 1]} : vector<8x256xf32> to vector<8x64xf32>
    %175 = vector.extract_strided_slice %171 {offsets = [0, 192], sizes = [8, 64], strides = [1, 1]} : vector<8x256xf32> to vector<8x64xf32>
    %176 = arith.mulf %173, %161 : vector<8x64xf32>
    %177 = arith.mulf %172, %174 : vector<8x64xf32>
    %178 = arith.addf %176, %177 : vector<8x64xf32>
    %179 = math.tanh %178 : vector<8x64xf32>
    %180 = arith.mulf %175, %179 : vector<8x64xf32>
    %181 = arith.truncf %180 : vector<8x64xf32> to vector<8x64xbf16>
    %cst_56 = arith.constant dense<0.000000e+00> : vector<8x256xf32>
    %182 = tpu.matmul %181, %46, %cst_56 {dimension_numbers = #tpu.dot_dimension_numbers<[1], [0], [0], [1], [0, 0, 1, 1], [], []>} : vector<8x64xbf16>, vector<64x256xbf16>, vector<8x256xf32> -> vector<8x256xf32>
    %c64 = arith.constant 64 : index
    %c0_57 = arith.constant 0 : index
    %183 = vector.load %arg14[%c64, %c0_57] : memref<80x256xf32, #tpu.memory_space<vmem>>, vector<8x256xf32>
    %184 = arith.addf %182, %183 : vector<8x256xf32>
    %185 = arith.mulf %184, %42 : vector<8x256xf32>
    %186 = math.tanh %185 : vector<8x256xf32>
    %187 = arith.mulf %186, %42 : vector<8x256xf32>
    %188 = arith.addf %187, %45 : vector<8x256xf32>
    %189 = vector.extract_strided_slice %188 {offsets = [0, 0], sizes = [8, 64], strides = [1, 1]} : vector<8x256xf32> to vector<8x64xf32>
    %190 = vector.extract_strided_slice %188 {offsets = [0, 64], sizes = [8, 64], strides = [1, 1]} : vector<8x256xf32> to vector<8x64xf32>
    %191 = vector.extract_strided_slice %188 {offsets = [0, 128], sizes = [8, 64], strides = [1, 1]} : vector<8x256xf32> to vector<8x64xf32>
    %192 = vector.extract_strided_slice %188 {offsets = [0, 192], sizes = [8, 64], strides = [1, 1]} : vector<8x256xf32> to vector<8x64xf32>
    %193 = arith.mulf %190, %178 : vector<8x64xf32>
    %194 = arith.mulf %189, %191 : vector<8x64xf32>
    %195 = arith.addf %193, %194 : vector<8x64xf32>
    %196 = math.tanh %195 : vector<8x64xf32>
    %197 = arith.mulf %192, %196 : vector<8x64xf32>
    %198 = arith.truncf %197 : vector<8x64xf32> to vector<8x64xbf16>
    %cst_58 = arith.constant dense<0.000000e+00> : vector<8x256xf32>
    %199 = tpu.matmul %198, %46, %cst_58 {dimension_numbers = #tpu.dot_dimension_numbers<[1], [0], [0], [1], [0, 0, 1, 1], [], []>} : vector<8x64xbf16>, vector<64x256xbf16>, vector<8x256xf32> -> vector<8x256xf32>
    %c72_59 = arith.constant 72 : index
    %c0_60 = arith.constant 0 : index
    %200 = vector.load %arg14[%c72_59, %c0_60] : memref<80x256xf32, #tpu.memory_space<vmem>>, vector<8x256xf32>
    %201 = arith.addf %199, %200 : vector<8x256xf32>
    %202 = arith.mulf %201, %42 : vector<8x256xf32>
    %203 = math.tanh %202 : vector<8x256xf32>
    %204 = arith.mulf %203, %42 : vector<8x256xf32>
    %205 = arith.addf %204, %45 : vector<8x256xf32>
    %206 = vector.extract_strided_slice %205 {offsets = [0, 0], sizes = [8, 64], strides = [1, 1]} : vector<8x256xf32> to vector<8x64xf32>
    %207 = vector.extract_strided_slice %205 {offsets = [0, 64], sizes = [8, 64], strides = [1, 1]} : vector<8x256xf32> to vector<8x64xf32>
    %208 = vector.extract_strided_slice %205 {offsets = [0, 128], sizes = [8, 64], strides = [1, 1]} : vector<8x256xf32> to vector<8x64xf32>
    %209 = vector.extract_strided_slice %205 {offsets = [0, 192], sizes = [8, 64], strides = [1, 1]} : vector<8x256xf32> to vector<8x64xf32>
    %210 = arith.mulf %207, %195 : vector<8x64xf32>
    %211 = arith.mulf %206, %208 : vector<8x64xf32>
    %212 = arith.addf %210, %211 : vector<8x64xf32>
    %213 = math.tanh %212 : vector<8x64xf32>
    %214 = arith.mulf %209, %213 : vector<8x64xf32>
    %215 = tpu.concatenate %78, %95, %112, %129, %146, %163, %180, %197, %214 in 0 : vector<8x64xf32>, vector<8x64xf32>, vector<8x64xf32>, vector<8x64xf32>, vector<8x64xf32>, vector<8x64xf32>, vector<8x64xf32>, vector<8x64xf32>, vector<8x64xf32> -> vector<72x64xf32>
    %c0_61 = arith.constant 0 : index
    %c0_62 = arith.constant 0 : index
    %216 = vector.load %arg11[%c0_61, %c0_62] : memref<64x128xf32, #tpu.memory_space<vmem>>, vector<64x128xf32>
    %cst_63 = arith.constant dense<0.000000e+00> : vector<72x128xf32>
    %217 = tpu.matmul %215, %216, %cst_63 {dimension_numbers = #tpu.dot_dimension_numbers<[1], [0], [0], [1], [0, 0, 1, 1], [], []>} : vector<72x64xf32>, vector<64x128xf32>, vector<72x128xf32> -> vector<72x128xf32>
    %c0_64 = arith.constant 0 : index
    %c0_65 = arith.constant 0 : index
    %218 = vector.load %arg12[%c0_64, %c0_65] : memref<1x128xf32, #tpu.memory_space<vmem>>, vector<1x128xf32>
    %219 = vector.broadcast %218 : vector<1x128xf32> to vector<72x128xf32>
    %220 = arith.addf %217, %219 : vector<72x128xf32>
    %c0_66 = arith.constant 0 : index
    %c0_67 = arith.constant 0 : index
    %221 = vector.load %arg13[%c0_66, %c0_67] : memref<72x128xf32, #tpu.memory_space<vmem>>, vector<72x128xf32>
    tpu.vector_store %arg13[%c0_66, %c0_67], %220 {strides = array<i32>} : memref<72x128xf32, #tpu.memory_space<vmem>>, vector<72x128xf32>,
    return
  }
}

</mosaic_0001>

<bundles_post_ra>
// kernel: cnn_to_rnn_forward.1
= control target key start
LH: loop header
LB: loop body
LE: loop exit
PB: predicated region body
PF: predicated region fallthrough
CT: control target
= control target key end

     0   :  { %vm250_vm0 = vcmask 1042432   ;;  %vm102_vm1 = vcmask 220160   ;;  %vm471_vm2 = vcmask 64512   ;;  %vm561_vm3 = vcmask 130048   ;;  %s2530_s2 = inlined_call_operand.vmem [shape: f32[27,16], index: 2, kind: input, shape index: {}]   ;;  %s2531_s0 = inlined_call_operand.vmem [shape: f32[392,27], index: 0, kind: input, shape index: {}]   ;;  %s2532_s3 = inlined_call_operand.vmem [shape: f32[1,16], index: 3, kind: input, shape index: {}]   ;;  %s2533_s1 = inlined_call_operand.vmem [shape: f32[8,392], index: 1, kind: input, shape index: {}]   ;;  %s2534_s5 = inlined_call_operand.vmem [shape: f32[1,32], index: 5, kind: input, shape index: {}]   ;;  %s2535_s4 = inlined_call_operand.vmem [shape: f32[16,32], index: 4, kind: input, shape index: {}]   ;;  %s2536_s7 = inlined_call_operand.vmem [shape: f32[32,256], index: 7, kind: input, shape index: {}]   ;;  %s2537_s8 = inlined_call_operand.vmem [shape: f32[1,256], index: 8, kind: input, shape index: {}]   ;;  %s2538_s6 = inlined_call_operand.vmem [shape: f32[64,32], index: 6, kind: input, shape index: {}]   ;;  %s2539_s10 = inlined_call_operand.vmem [shape: bf16[64,256], index: 10, kind: input, shape index: {}]   ;;  %s2540_s9 = inlined_call_operand.vmem [shape: f32[1,256], index: 9, kind: input, shape index: {}]   ;;  %s2541_s11 = inlined_call_operand.vmem [shape: f32[64,128], index: 11, kind: input, shape index: {}]   ;;  %s2542_s12 = inlined_call_operand.vmem [shape: f32[1,128], index: 12, kind: input, shape index: {}]   ;;  %s2543_s13 = inlined_call_operand.vmem [shape: f32[72,128], index: 13, kind: output, shape index: {}]  }
   0x1   :  { %v97_v0 = vld [vmem:[%s2530_s2 + $0x18] sm:$0x7]  ;;  %v96_v1 = vld [vmem:[%s2530_s2 + $0x10] sm:$0xff]  ;;  %v95_v2 = vld [vmem:[%s2530_s2 + $0x8] sm:$0xff]  ;;  %vm600_vm4 = vcmask 261120   ;;  %vm878_vm6 = vcmask 523264  }
   0x2   :  { %1455 = vmatpush.msk.msra.mxu0 %vm250_vm0, %v97_v0  ;;  %1592 = vmatpush.msk.msra.mxu2 %vm250_vm0, %v97_v0  ;;  %v94_v3 = vld [vmem:[%s2530_s2] sm:$0xff]  ;;  %v46_v5 = vld [vmem:[%s2531_s0 + $0x8] sm:$0xff]  ;;  %v47_v6 = vld [vmem:[%s2531_s0 + $0x10] sm:$0xff] }
   0x3   :  { %1593 = vmatpush.msk.msra.mxu3 %vm250_vm0, %v97_v0  ;;  %v45_v4 = vld [vmem:[%s2531_s0] sm:$0xff]  ;;  %v48_v7 = vld [vmem:[%s2531_s0 + $0x18] sm:$0xff]  ;;  %v50_v9 = vld [vmem:[%s2531_s0 + $0x28] sm:$0xff] }
   0x4   :  { %267 = vmatpush.msra.mxu0 %v96_v1  ;;  %1594 = vmatpush.msra.mxu2 %v96_v1  ;;  %v49_v8 = vld [vmem:[%s2531_s0 + $0x20] sm:$0xff]  ;;  %v76_v10 = vld [vmem:[%s2531_s0 + $0xf8] sm:$0xff]  ;;  %v51_v11 = vld [vmem:[%s2531_s0 + $0x30] sm:$0xff] }
   0x5   :  { %1595 = vmatpush.msra.mxu3 %v96_v1  ;;  %v77_v12 = vld [vmem:[%s2531_s0 + $0x100] sm:$0xff]  ;;  %v52_v13 = vld [vmem:[%s2531_s0 + $0x38] sm:$0xff]  ;;  %v78_v14 = vld [vmem:[%s2531_s0 + $0x108] sm:$0xff] }
   0x6   :  { %268 = vmatpush.msra.mxu0 %v95_v2  ;;  %1596 = vmatpush.msra.mxu2 %v95_v2  ;;  %v53_v15 = vld [vmem:[%s2531_s0 + $0x40] sm:$0xff]  ;;  %v79_v16 = vld [vmem:[%s2531_s0 + $0x110] sm:$0xff]  ;;  %v54_v17 = vld [vmem:[%s2531_s0 + $0x48] sm:$0xff] }
   0x7   :  { %1597 = vmatpush.msra.mxu3 %v95_v2  ;;  %v87_v18 = vld [vmem:[%s2531_s0 + $0x150] sm:$0xff]  ;;  %v80_v19 = vld [vmem:[%s2531_s0 + $0x118] sm:$0xff]  ;;  %v81_v22 = vld [vmem:[%s2531_s0 + $0x120] sm:$0xff] }
   0x8   :  { %269 = vmatpush.msra.mxu0 %v94_v3  ;;  %1598 = vmatpush.msra.mxu2 %v94_v3  ;;  %v55_v20 = vld [vmem:[%s2531_s0 + $0x50] sm:$0xff]  ;;  %v88_v21 = vld [vmem:[%s2531_s0 + $0x158] sm:$0xff]  ;;  %v89_v24 = vld [vmem:[%s2531_s0 + $0x160] sm:$0xff] }
   0x9   :  { %1456 = vmatmul.msk.f32.vlgmr.msra.gmra.mxu0 %vm102_vm1, %v45_v4  ;;  %1599 = vmatpush.msra.mxu3 %v94_v3  ;;  %v56_v23 = vld [vmem:[%s2531_s0 + $0x58] sm:$0xff]  ;;  %v82_v25 = vld [vmem:[%s2531_s0 + $0x128] sm:$0xff]  ;;  %v57_v26 = vld [vmem:[%s2531_s0 + $0x60] sm:$0xff] }
   0xa   :  { %1487 = vmatmul.msk.f32.vlgmr.msra.gmra.mxu2 %vm102_vm1, %v76_v10  ;;  %1498 = vmatmul.msk.f32.vlgmr.msra.gmra.mxu3 %vm102_vm1, %v87_v18  ;;  %v90_v27 = vld [vmem:[%s2531_s0 + $0x168] sm:$0xff]  ;;  %v83_v28 = vld [vmem:[%s2531_s0 + $0x130] sm:$0xff]  ;;  %v84_v31 = vld [vmem:[%s2531_s0 + $0x138] sm:$0xff] }
   0xb   :  { %v58_v29 = vld [vmem:[%s2531_s0 + $0x68] sm:$0xff]  ;;  %v91_v30 = vld [vmem:[%s2531_s0 + $0x170] sm:$0xff]  ;;  %v92_v33 = vld [vmem:[%s2531_s0 + $0x178] sm:$0xff] }
   0xc   :  { %v59_v32 = vld [vmem:[%s2531_s0 + $0x70] sm:$0xff]  ;;  %v85_v34 = vld [vmem:[%s2531_s0 + $0x140] sm:$0xff]  ;;  %v60_v35 = vld [vmem:[%s2531_s0 + $0x78] sm:$0xff] }
   0xd   :  { %v86_v36 = vld [vmem:[%s2531_s0 + $0x148] sm:$0xff]  ;;  %v61_v38 = vld [vmem:[%s2531_s0 + $0x80] sm:$0xff]  ;;  %v63_v42 = vld [vmem:[%s2531_s0 + $0x90] sm:$0xff] }
   0xe   :  { %v62_v40 = vld [vmem:[%s2531_s0 + $0x88] sm:$0xff]  ;;  %v64_v44 = vld [vmem:[%s2531_s0 + $0x98] sm:$0xff]  ;;  %v65_v46 = vld [vmem:[%s2531_s0 + $0xa0] sm:$0xff] }
   0xf   :  { %v66_v48 = vld [vmem:[%s2531_s0 + $0xa8] sm:$0xff]  ;;  %v67_v50 = vld [vmem:[%s2531_s0 + $0xb0] sm:$0xff]  ;;  %v68_v53 = vld [vmem:[%s2531_s0 + $0xb8] sm:$0xff] }
  0x10   :  { %v69_v56 = vld [vmem:[%s2531_s0 + $0xc0] sm:$0xff]  ;;  %v70_v59 = vld [vmem:[%s2531_s0 + $0xc8] sm:$0xff]  ;;  %v71_v63 = vld [vmem:[%s2531_s0 + $0xd0] sm:$0xff] }
  0x11   :  { %1457 = vmatmul.msk.f32.gmra.mxu0 %vm102_vm1, %v46_v5  ;;  %v72_v3 = vld [vmem:[%s2531_s0 + $0xd8] sm:$0xff]  ;;  %v1984_v18 = vld [vmem:[%s2532_s3] ss:$0 sm:$0xff] }
  0x12   :  { %1488 = vmatmul.msk.f32.gmra.mxu2 %vm102_vm1, %v77_v12  ;;  %1499 = vmatmul.msk.f32.gmra.mxu3 %vm102_vm1, %v88_v21 }
  0x19   :  { %1458 = vmatmul.msk.f32.gmra.mxu0 %vm102_vm1, %v47_v6 }
  0x1a   :  { %1489 = vmatmul.msk.f32.gmra.mxu2 %vm102_vm1, %v78_v14  ;;  %1500 = vmatmul.msk.f32.gmra.mxu3 %vm102_vm1, %v89_v24 }
  0x21   :  { %1459 = vmatmul.msk.f32.gmra.mxu0 %vm102_vm1, %v48_v7  ;;  %v73_v7 = vld [vmem:[%s2531_s0 + $0xe0] sm:$0xff] }
  0x22   :  { %1490 = vmatmul.msk.f32.gmra.mxu2 %vm102_vm1, %v79_v16  ;;  %1501 = vmatmul.msk.f32.gmra.mxu3 %vm102_vm1, %v90_v27  ;;  %v93_v16 = vld [vmem:[%s2531_s0 + $0x180] sm:$0xff] }
  0x29   :  { %1460 = vmatmul.msk.f32.gmra.mxu0 %vm102_vm1, %v49_v8 }
  0x2a   :  { %1491 = vmatmul.msk.f32.gmra.mxu2 %vm102_vm1, %v80_v19  ;;  %1502 = vmatmul.msk.f32.gmra.mxu3 %vm102_vm1, %v91_v30 }
  0x31   :  { %1461 = vmatmul.msk.f32.gmra.mxu0 %vm102_vm1, %v50_v9 }
  0x32   :  { %1492 = vmatmul.msk.f32.gmra.mxu2 %vm102_vm1, %v81_v22  ;;  %1503 = vmatmul.msk.f32.gmra.mxu3 %vm102_vm1, %v92_v33 }
  0x39   :  { %1462 = vmatmul.msk.f32.gmra.mxu0 %vm102_vm1, %v51_v11  ;;  %v74_v11 = vld [vmem:[%s2531_s0 + $0xe8] sm:$0xff] }
  0x3a   :  { %1493 = vmatmul.msk.f32.gmra.mxu2 %vm102_vm1, %v82_v25  ;;  %1504 = vmatmul.msk.f32.gmra.mxu3 %vm102_vm1, %v93_v16 }
  0x41   :  { %1463 = vmatmul.msk.f32.gmra.mxu0 %vm102_vm1, %v52_v13 }
  0x42   :  { %1494 = vmatmul.msk.f32.gmra.mxu2 %vm102_vm1, %v83_v28 }
  0x49   :  { %1464 = vmatmul.msk.f32.gmra.mxu0 %vm102_vm1, %v53_v15  ;;  %v75_v15 = vld [vmem:[%s2531_s0 + $0xf0] sm:$0xff] }
  0x4a   :  { %1495 = vmatmul.msk.f32.gmra.mxu2 %vm102_vm1, %v84_v31 }
  0x51   :  { %1465 = vmatmul.msk.f32.gmra.mxu0 %vm102_vm1, %v54_v17 }
  0x52   :  { %1496 = vmatmul.msk.f32.gmra.mxu2 %vm102_vm1, %v85_v34 }
  0x59   :  { %1466 = vmatmul.msk.f32.gmra.mxu0 %vm102_vm1, %v55_v20 }
  0x5a   :  { %1497 = vmatmul.msk.f32.gmra.mxu2 %vm102_vm1, %v86_v36 }
  0x61   :  { %1467 = vmatmul.msk.f32.gmra.mxu0 %vm102_vm1, %v56_v23 }
  0x69   :  { %1468 = vmatmul.msk.f32.gmra.mxu0 %vm102_vm1, %v57_v26 }
  0x71   :  { %1469 = vmatmul.msk.f32.gmra.mxu0 %vm102_vm1, %v58_v29 }
  0x79   :  { %1470 = vmatmul.msk.f32.gmra.mxu0 %vm102_vm1, %v59_v32 }
  0x81   :  { %1471 = vmatmul.msk.f32.gmra.mxu0 %vm102_vm1, %v60_v35 }
  0x86   :  { %v1881_v37 = vpop.f32.mrf.mxu0 }
  0x89   :  { %1472 = vmatmul.msk.f32.gmra.mxu0 %vm102_vm1, %v61_v38 }
  0x8d   :  { %v1922_v51 = vpop.f32.mrf.mxu2  ;;  %v397_v61 = vpop.f32.mrf.mxu3 }
  0x8e   :  { %v1887_v39 = vpop.f32.mrf.mxu0  ;;  %v365_v16 = vadd.f32 %v1984_v18, %v1922_v51 }
  0x91   :  { %1473 = vmatmul.msk.f32.gmra.mxu0 %vm102_vm1, %v62_v40  ;;  %v398_v40 = vadd.f32 %v1984_v18, %v397_v61 }
  0x95   :  { %v1930_v54 = vpop.f32.mrf.mxu2  ;;  %v400_v1 = vpop.f32.mrf.mxu3 }
  0x96   :  { %v1893_v41 = vpop.f32.mrf.mxu0  ;;  %v401_v30 = vadd.f32 %v1984_v18, %v400_v1  ;;  %v460_v1 = vmax.f32 %v398_v40, 0.0 }
  0x99   :  { %1474 = vmatmul.msk.f32.gmra.mxu0 %vm102_vm1, %v63_v42 }
  0x9d   :  { %v1938_v57 = vpop.f32.mrf.mxu2  ;;  %v403_v5 = vpop.f32.mrf.mxu3 }
  0x9e   :  { %v1899_v43 = vpop.f32.mrf.mxu0  ;;  %v404_v34 = vadd.f32 %v1984_v18, %v403_v5 }
  0x9f   :  { %v281_v51 = vadd.f32 %v1984_v18, %v1899_v43 }
  0xa0   :  { %v462_v42 = vmax.f32 %v404_v34, 0.0 }
  0xa1   :  { %1475 = vmatmul.msk.f32.gmra.mxu0 %vm102_vm1, %v64_v44 }
  0xa5   :  { %v1946_v60 = vpop.f32.mrf.mxu2  ;;  %v406_v9 = vpop.f32.mrf.mxu3 }
  0xa6   :  { %v1905_v45 = vpop.f32.mrf.mxu0  ;;  %v407_v29 = vadd.f32 %v1984_v18, %v406_v9 }
  0xa8   :  { %v463_v35 = vmax.f32 %v407_v29, 0.0 }
  0xa9   :  { %1476 = vmatmul.msk.f32.gmra.mxu0 %vm102_vm1, %v65_v46  ;;  %v461_v46 = vmax.f32 %v401_v30, 0.0 }
  0xad   :  { %v1952_v0 = vpop.f32.mrf.mxu2  ;;  %v409_v13 = vpop.f32.mrf.mxu3 }
  0xae   :  { %v1911_v47 = vpop.f32.mrf.mxu0  ;;  %v410_v24 = vadd.f32 %v1984_v18, %v409_v13 }
  0xb0   :  { %v464_v31 = vmax.f32 %v410_v24, 0.0 }
  0xb1   :  { %1477 = vmatmul.msk.f32.gmra.mxu0 %vm102_vm1, %v66_v48 }
  0xb5   :  { %v1958_v4 = vpop.f32.mrf.mxu2  ;;  %v412_v19 = vpop.f32.mrf.mxu3 }
  0xb6   :  { %v1917_v49 = vpop.f32.mrf.mxu0  ;;  %v413_v20 = vadd.f32 %v1984_v18, %v412_v19  ;;  %v377_v19 = vadd.f32 %v1984_v18, %v1952_v0  ;;  %v371_v0 = vadd.f32 %v1984_v18, %v1938_v57 }
  0xb7   :  { %v290_v9 = vadd.f32 %v1984_v18, %v1917_v49 }
  0xb8   :  { %v465_v25 = vmax.f32 %v413_v20, 0.0  ;;  %v374_v20 = vadd.f32 %v1984_v18, %v1946_v60  ;;  %v453_v60 = vmax.f32 %v377_v19, 0.0 }
  0xb9   :  { %1478 = vmatmul.msk.f32.gmra.mxu0 %vm102_vm1, %v67_v50 }
  0xba   :  { %515 = vmatpush.msrb.mxu3 %v465_v25  ;;  %v368_v25 = vadd.f32 %v1984_v18, %v1930_v54  ;;  %v452_v43 = vmax.f32 %v374_v20, 0.0 }
  0xbc   :  { %516 = vmatpush.msrb.mxu3 %v464_v31  ;;  %v450_v29 = vmax.f32 %v368_v25, 0.0 }
  0xbd   :  { %v1964_v8 = vpop.f32.mrf.mxu2 }
  0xbe   :  { %v1925_v52 = vpop.f32.mrf.mxu0  ;;  %517 = vmatpush.msrb.mxu3 %v463_v35 }
  0xbf   :  { %v293_v5 = vadd.f32 %v1984_v18, %v1925_v52 }
  0xc0   :  { %518 = vmatpush.msrb.mxu3 %v462_v42 }
  0xc1   :  { %1479 = vmatmul.msk.f32.gmra.mxu0 %vm102_vm1, %v68_v53  ;;  %v425_v49 = vmax.f32 %v293_v5, 0.0 }
  0xc2   :  { %519 = vmatpush.msrb.mxu3 %v461_v46 }
  0xc4   :  { %520 = vmatpush.msrb.mxu3 %v460_v1 }
  0xc5   :  { %v1970_v12 = vpop.f32.mrf.mxu2 }
  0xc6   :  { %v1933_v55 = vpop.f32.mrf.mxu0  ;;  %v386_v13 = vadd.f32 %v1984_v18, %v1970_v12  ;;  %v424_v12 = vmax.f32 %v290_v9, 0.0  ;;  %v470_v9 = vld [vmem:[%s2533_s1 + $0x18] sm:$0xff] }
  0xc7   :  { %v296_v61 = vadd.f32 %v1984_v18, %v1933_v55 }
  0xc9   :  { %1480 = vmatmul.msk.f32.gmra.mxu0 %vm102_vm1, %v69_v56  ;;  %v426_v55 = vmax.f32 %v296_v61, 0.0 }
  0xcd   :  { %v388_v17 = vpop.f32.mrf.mxu2 }
  0xce   :  { %v1941_v58 = vpop.f32.mrf.mxu0 }
  0xcf   :  { %v299_v56 = vadd.f32 %v1984_v18, %v1941_v58  ;;  %v389_v58 = vadd.f32 %v1984_v18, %v388_v17  ;;  %v456_v17 = vmax.f32 %v386_v13, 0.0 }
  0xd1   :  { %1481 = vmatmul.msk.f32.gmra.mxu0 %vm102_vm1, %v70_v59  ;;  %v457_v52 = vmax.f32 %v389_v58, 0.0 }
  0xd5   :  { %v391_v26 = vpop.f32.mrf.mxu2 }
  0xd6   :  { %v301_v62 = vpop.f32.mrf.mxu0 }
  0xd7   :  { %v302_v48 = vadd.f32 %v1984_v18, %v301_v62  ;;  %v392_v62 = vadd.f32 %v1984_v18, %v391_v26  ;;  %v275_v26 = vadd.f32 %v1984_v18, %v1887_v39 }
  0xd9   :  { %1482 = vmatmul.msk.f32.gmra.mxu0 %vm102_vm1, %v71_v63  ;;  %v419_v30 = vmax.f32 %v275_v26, 0.0 }
  0xdd   :  { %v394_v53 = vpop.f32.mrf.mxu2 }
  0xde   :  { %v304_v2 = vpop.f32.mrf.mxu0  ;;  %v395_v63 = vadd.f32 %v1984_v18, %v394_v53  ;;  %v467_v53 = vld [vmem:[%s2533_s1] sm:$0xff] }
  0xdf   :  { %v305_v36 = vadd.f32 %v1984_v18, %v304_v2  ;;  %v428_v2 = vmax.f32 %v302_v48, 0.0 }
  0xe1   :  { %1483 = vmatmul.msk.f32.gmra.mxu0 %vm102_vm1, %v72_v3  ;;  %v429_v59 = vmax.f32 %v305_v36, 0.0  ;;  %v459_v3 = vmax.f32 %v395_v63, 0.0 }
  0xe3   :  { %521 = vmatpush.msrb.mxu3 %v459_v3 }
  0xe6   :  { %v307_v6 = vpop.f32.mrf.mxu0 }
  0xe7   :  { %v308_v32 = vadd.f32 %v1984_v18, %v307_v6  ;;  %v427_v6 = vmax.f32 %v299_v56, 0.0  ;;  %v469_v56 = vld [vmem:[%s2533_s1 + $0x10] sm:$0xff] }
  0xe9   :  { %1484 = vmatmul.msk.f32.gmra.mxu0 %vm102_vm1, %v73_v7  ;;  %v430_v50 = vmax.f32 %v308_v32, 0.0  ;;  %v458_v7 = vmax.f32 %v392_v62, 0.0 }
  0xeb   :  { %522 = vmatpush.msrb.mxu3 %v458_v7 }
  0xed   :  { %523 = vmatpush.msrb.mxu3 %v457_v52 }
  0xee   :  { %v310_v10 = vpop.f32.mrf.mxu0 }
  0xef   :  { %v311_v27 = vadd.f32 %v1984_v18, %v310_v10  ;;  %524 = vmatpush.msrb.mxu3 %v456_v17 }
  0xf1   :  { %1485 = vmatmul.msk.f32.gmra.mxu0 %vm102_vm1, %v74_v11  ;;  %v431_v38 = vmax.f32 %v311_v27, 0.0  ;;  %v383_v11 = vadd.f32 %v1984_v18, %v1964_v8  ;;  %v284_v8 = vadd.f32 %v1984_v18, %v1905_v45  ;;  %v278_v45 = vadd.f32 %v1984_v18, %v1893_v41 }
  0xf2   :  { %v421_v27 = vmax.f32 %v281_v51, 0.0  ;;  %v272_v41 = vadd.f32 %v1984_v18, %v1881_v37 }
  0xf3   :  { %v422_v24 = vmax.f32 %v284_v8, 0.0  ;;  %v420_v57 = vmax.f32 %v278_v45, 0.0 }
  0xf4   :  { %v418_v54 = vmax.f32 %v272_v41, 0.0 }
  0xf6   :  { %v313_v14 = vpop.f32.mrf.mxu0 }
  0xf7   :  { %v314_v22 = vadd.f32 %v1984_v18, %v313_v14  ;;  %v380_v14 = vadd.f32 %v1984_v18, %v1958_v4  ;;  %v455_v4 = vmax.f32 %v383_v11, 0.0 }
  0xf9   :  { %1486 = vmatmul.msk.f32.gmra.mxu0 %vm102_vm1, %v75_v15  ;;  %v432_v33 = vmax.f32 %v314_v22, 0.0  ;;  %v287_v15 = vadd.f32 %v1984_v18, %v1911_v47  ;;  %v454_v47 = vmax.f32 %v380_v14, 0.0  ;;  %v449_v22 = vmax.f32 %v365_v16, 0.0  ;;  %525 = vmatpush.msrb.mxu3 %v455_v4 }
  0xfb   :  { %495 = vmatpush.msrb.mxu2 %v449_v22  ;;  %526 = vmatpush.msrb.mxu3 %v454_v47 }
  0xfd   :  { %527 = vmatpush.msrb.mxu3 %v453_v60 }
  0xfe   :  { %v316_v21 = vpop.f32.mrf.mxu0 }
  0xff   :  { %v317_v23 = vadd.f32 %v1984_v18, %v316_v21  ;;  %v423_v21 = vmax.f32 %v287_v15, 0.0  ;;  %528 = vmatpush.msrb.mxu3 %v452_v43 }
 0x101   :  { %v433_v28 = vmax.f32 %v317_v23, 0.0 }
 0x103   :  { %475 = vmatpush.msra.mxu1 %v433_v28  ;;  %v451_v28 = vmax.f32 %v371_v0, 0.0 }
 0x105   :  { %476 = vmatpush.msra.mxu1 %v432_v33  ;;  %529 = vmatpush.msrb.mxu3 %v451_v28  ;;  %v590_v28 = vld [vmem:[%s2536_s7 + $0x20] sm:$0xff] }
 0x106   :  { %v1997_v44 = vpop.f32.mrf.mxu0 }
 0x107   :  { %477 = vmatpush.msra.mxu1 %v431_v38  ;;  %530 = vmatpush.msrb.mxu3 %v450_v29  ;;  %v591_v29 = vld [vmem:[%s2536_s7 + $0x28] sm:$0xff] }
 0x108   :  { %531 = vmatmul.f32.vlgmr.msrb.gmra.mxu3 %v469_v56 }
 0x109   :  { %478 = vmatpush.msra.mxu1 %v430_v50 }
 0x10b   :  { %479 = vmatpush.msra.mxu1 %v429_v59 }
 0x10d   :  { %480 = vmatpush.msra.mxu1 %v428_v2  ;;  %v415_v2 = vpop.f32.mrf.mxu3 }
 0x10e   :  { %v2011_v10 = vpop.f32.mrf.mxu0  ;;  %v416_v5 = vadd.f32 %v1984_v18, %v415_v2 }
 0x10f   :  { %481 = vmatpush.msra.mxu1 %v427_v6  ;;  %v323_v47 = vadd.f32 %v1984_v18, %v2011_v10  ;;  %v556_v10 = vld [vmem:[%s2535_s4 + $0x8] sm:$0xff] }
 0x110   :  { %v466_v7 = vmax.f32 %v416_v5, 0.0 }
 0x111   :  { %482 = vmatpush.msra.mxu1 %v426_v55  ;;  %v435_v45 = vmax.f32 %v323_v47, 0.0  ;;  %v1588_v47 = vld [vmem:[%s2539_s10 + $0x24] sm:$0xf] }
 0x113   :  { %483 = vmatpush.msra.mxu1 %v425_v49 }
 0x115   :  { %484 = vmatpush.msra.mxu1 %v424_v12 }
 0x116   :  { %v2031_v23 = vpop.f32.mrf.mxu0 }
 0x117   :  { %485 = vmatpush.msra.mxu1 %v423_v21  ;;  %v326_v4 = vadd.f32 %v1984_v18, %v2031_v23  ;;  %v320_v21 = vadd.f32 %v1984_v18, %v1997_v44  ;;  %v468_v23 = vld [vmem:[%s2533_s1 + $0x8] sm:$0xff]  ;;  %v592_v44 = vld [vmem:[%s2536_s7 + $0x30] sm:$0xff] }
 0x118   :  { %616 = vmatpush.msra.mxu3 %v592_v44 }
 0x119   :  { %486 = vmatpush.msra.mxu1 %v422_v24  ;;  %v436_v22 = vmax.f32 %v326_v4, 0.0  ;;  %v434_v0 = vmax.f32 %v320_v21, 0.0 }
 0x11a   :  { %617 = vmatpush.msra.mxu3 %v590_v28 }
 0x11b   :  { %487 = vmatpush.msra.mxu1 %v421_v27 }
 0x11d   :  { %488 = vmatpush.msra.mxu1 %v420_v57  ;;  %v593_v57 = vld [vmem:[%s2536_s7 + $0x38] sm:$0xff] }
 0x11e   :  { %v328_v31 = vpop.f32.mrf.mxu0 }
 0x11f   :  { %489 = vmatpush.msra.mxu1 %v419_v30  ;;  %v329_v12 = vadd.f32 %v1984_v18, %v328_v31  ;;  %v588_v30 = vld [vmem:[%s2536_s7 + $0x10] sm:$0xff]  ;;  %v589_v31 = vld [vmem:[%s2536_s7 + $0x18] sm:$0xff] }
 0x120   :  { %618 = vmatpush.msra.mxu3 %v588_v30 }
 0x121   :  { %490 = vmatpush.msra.mxu1 %v418_v54  ;;  %v437_v51 = vmax.f32 %v329_v12, 0.0  ;;  %v586_v54 = vld [vmem:[%s2536_s7] sm:$0xff] }
 0x122   :  { %491 = vmatmul.f32.vlgmr.msra.gmra.mxu1 %v467_v53  ;;  %619 = vmatpush.msra.mxu3 %v586_v54  ;;  %v1543_v12 = vld [vmem:[%s2539_s10 + $0x20] sm:$0xf] }
 0x123   :  { %550 = vmatpush.msrb.mxu1 %v466_v7 }
 0x124   :  { %737 = vmatpush.msrb.mxu3 %v593_v57 }
 0x125   :  { %636 = vmatpush.msra.mxu1 %v593_v57 }
 0x126   :  { %v331_v39 = vpop.f32.mrf.mxu0  ;;  %738 = vmatpush.msrb.mxu3 %v591_v29 }
 0x127   :  { %v332_v17 = vadd.f32 %v1984_v18, %v331_v39  ;;  %637 = vmatpush.msra.mxu1 %v591_v29  ;;  %v587_v39 = vld [vmem:[%s2536_s7 + $0x8] sm:$0xff] }
 0x128   :  { %739 = vmatpush.msrb.mxu3 %v589_v31 }
 0x129   :  { %v438_v20 = vmax.f32 %v332_v17, 0.0  ;;  %638 = vmatpush.msra.mxu1 %v589_v31  ;;  %v651_v31 = vld [vmem:[%s2538_s6 + $0x28] sm:$0xff] }
 0x12a   :  { %1505 = vmatmul.msk.f32.vlgmr.msrb.gmra.mxu1 %vm471_vm2, %v470_v9  ;;  %740 = vmatpush.msrb.mxu3 %v587_v39 }
 0x12b   :  { %639 = vmatpush.msra.mxu1 %v587_v39  ;;  %v653_v39 = vld [vmem:[%s2538_s6 + $0x38] sm:$0xff] }
 0x12e   :  { %v334_v32 = vpop.f32.mrf.mxu0 }
 0x12f   :  { %v335_v49 = vadd.f32 %v1984_v18, %v334_v32  ;;  %v1603_v32 = vld [vmem:[%s2534_s5] ss:$0 sm:$0xff]  ;;  %s1666_s5 = smov 64  }
 0x131   :  { %v439_v19 = vmax.f32 %v335_v49, 0.0  ;;  %v1590_v49 = vld [vmem:[%s2539_s10 + $0x34] sm:$0xf] }
 0x136   :  { %v337_v33 = vpop.f32.mrf.mxu0 }
 0x137   :  { %v338_v14 = vadd.f32 %v1984_v18, %v337_v33 }
 0x139   :  { %v440_v8 = vmax.f32 %v338_v14, 0.0  ;;  %v1551_v14 = vld [vmem:[%s2539_s10 + $0x30] sm:$0xf] }
 0x13e   :  { %v340_v34 = vpop.f32.mrf.mxu0 }
 0x13f   :  { %v341_v13 = vadd.f32 %v1984_v18, %v340_v34 }
 0x141   :  { %v441_v16 = vmax.f32 %v341_v13, 0.0  ;;  %v648_v13 = vld [vmem:[%s2538_s6 + $0x10] sm:$0xff] }
 0x146   :  { %v343_v35 = vpop.f32.mrf.mxu0 }
 0x147   :  { %v344_v55 = vadd.f32 %v1984_v18, %v343_v35 }
 0x149   :  { %v442_v15 = vmax.f32 %v344_v55, 0.0  ;;  %v646_v55 = vld [vmem:[%s2538_s6] sm:$0xff] }
 0x14e   :  { %v346_v36 = vpop.f32.mrf.mxu0 }
 0x14f   :  { %v347_v6 = vadd.f32 %v1984_v18, %v346_v36  ;;  %v792_v36 = vlaneseq }
 0x151   :  { %v443_v52 = vmax.f32 %v347_v6, 0.0 }
 0x156   :  { %v349_v37 = vpop.f32.mrf.mxu0 }
 0x157   :  { %v350_v62 = vadd.f32 %v1984_v18, %v349_v37  ;;  %v793_v37 = vand.u32 127, %v792_v36 }
 0x159   :  { %v444_v11 = vmax.f32 %v350_v62, 0.0 }
 0x15e   :  { %v352_v38 = vpop.f32.mrf.mxu0 }
 0x15f   :  { %v353_v1 = vadd.f32 %v1984_v18, %v352_v38  ;;  %v794_v38 = vadd.s32 128, %v793_v37 }
 0x161   :  { %v445_v58 = vmax.f32 %v353_v1, 0.0  ;;  %vm798_vm5 = vcmp.lt.s32.totalorder %v794_v38, 192 }
 0x166   :  { %v355_v40 = vpop.f32.mrf.mxu0 }
 0x167   :  { %v356_v59 = vadd.f32 %v1984_v18, %v355_v40  ;;  %v594_v40 = vld [vmem:[%s2537_s8] sm:$0x3] }
 0x168   :  { %v596_v56 = vperm.slane %v594_v40, 0 }
 0x169   :  { %v446_v3 = vmax.f32 %v356_v59, 0.0 }
 0x16e   :  { %v358_v42 = vpop.f32.mrf.mxu0 }
 0x16f   :  { %v359_v48 = vadd.f32 %v1984_v18, %v358_v42  ;;  %v597_v42 = vperm.slane %v594_v40, 1 }
 0x171   :  { %v447_v61 = vmax.f32 %v359_v48, 0.0  ;;  %v1665_v48 = vmov 0.5  }
 0x172   :  { %v2116_v5 = vsel %vm798_vm5, 0.0, %v1665_v48 }
 0x176   :  { %v361_v46 = vpop.f32.mrf.mxu0 }
 0x177   :  { %v362_v50 = vadd.f32 %v1984_v18, %v361_v46  ;;  %v555_v18 = vld [vmem:[%s2535_s4] sm:$0xff] }
 0x179   :  { %v448_v63 = vmax.f32 %v362_v50, 0.0  ;;  %v2112_v50 = vsel %vm798_vm5, 1.0, %v1665_v48 }
 0x17b   :  { %496 = vmatpush.msrb.mxu2 %v448_v63 }
 0x17d   :  { %497 = vmatpush.msrb.mxu2 %v447_v61 }
 0x17f   :  { %498 = vmatpush.msrb.mxu2 %v446_v3 }
 0x181   :  { %499 = vmatpush.msrb.mxu2 %v445_v58 }
 0x183   :  { %500 = vmatpush.msrb.mxu2 %v444_v11  ;;  %v647_v11 = vld [vmem:[%s2538_s6 + $0x8] sm:$0xff] }
 0x185   :  { %501 = vmatpush.msrb.mxu2 %v443_v52 }
 0x187   :  { %502 = vmatpush.msrb.mxu2 %v442_v15  ;;  %v1591_v15 = vld [vmem:[%s2539_s10 + $0x34] sm:$0xf0] }
 0x188   :  { %v2144_v17 = vor.u32 %v1591_v15, %v1551_v14 }
 0x189   :  { %503 = vmatpush.msrb.mxu2 %v441_v16 }
 0x18b   :  { %504 = vmatpush.msrb.mxu2 %v440_v8  ;;  %v532_v25 = vpop.f32.mrf.mxu3  ;;  %v1553_v8 = vld [vmem:[%s2539_s10 + $0x38] sm:$0xf0] }
 0x18d   :  { %505 = vmatpush.msrb.mxu2 %v439_v19  ;;  %v1589_v19 = vld [vmem:[%s2539_s10 + $0x24] sm:$0xf0] }
 0x18e   :  { %v2166_v21 = vor.u32 %v1589_v19, %v1543_v12 }
 0x18f   :  { %506 = vmatpush.msrb.mxu2 %v438_v20  ;;  %v2157_v20 = vor.u32 %v1590_v49, %v1553_v8 }
 0x191   :  { %507 = vmatpush.msrb.mxu2 %v437_v51  ;;  %v1545_v51 = vld [vmem:[%s2539_s10 + $0x28] sm:$0xf0]  ;;  %899 = vmatpush.bf16.msrb.mxu1 %v2157_v20 }
 0x193   :  { %508 = vmatpush.msrb.mxu2 %v436_v22  ;;  %v2171_v22 = vor.u32 %v1588_v47, %v1545_v51 }
 0x195   :  { %509 = vmatpush.msrb.mxu2 %v435_v45  ;;  %v649_v45 = vld [vmem:[%s2538_s6 + $0x18] sm:$0xff]  ;;  %900 = vmatpush.bf16.msrb.mxu1 %v2171_v22 }
 0x197   :  { %510 = vmatpush.msrb.mxu2 %v434_v0  ;;  %v1535_v0 = vld [vmem:[%s2539_s10 + $0x10] sm:$0xf] }
 0x198   :  { %511 = vmatmul.f32.vlgmr.msrb.gmra.mxu2 %v468_v23  ;;  %v1587_v23 = vld [vmem:[%s2539_s10 + $0x14] sm:$0xf0] }
 0x199   :  { %579 = vmatpush.msra.mxu2 %v556_v10  ;;  %v1586_v10 = vld [vmem:[%s2539_s10 + $0x14] sm:$0xf] }
 0x19b   :  { %580 = vmatpush.msra.mxu2 %v555_v18  ;;  %v2189_v18 = vor.u32 %v1587_v23, %v1535_v0 }
 0x19d   :  { %696 = vmatpush.msrb.mxu2 %v592_v44  ;;  %v1537_v44 = vld [vmem:[%s2539_s10 + $0x18] sm:$0xf0] }
 0x19f   :  { %v492_v24 = vpop.f32.mrf.mxu1  ;;  %697 = vmatpush.msrb.mxu2 %v590_v28 }
 0x1a1   :  { %698 = vmatpush.msrb.mxu2 %v588_v30  ;;  %v650_v30 = vld [vmem:[%s2538_s6 + $0x20] sm:$0xff] }
 0x1a3   :  { %699 = vmatpush.msrb.mxu2 %v586_v54  ;;  %v652_v54 = vld [vmem:[%s2538_s6 + $0x30] sm:$0xff] }
 0x1a7   :  { %v552_v26 = vpop.f32.mrf.mxu1 }
 0x21b   :  { %v512_v60 = vpop.f32.mrf.mxu2 }
 0x21c   :  { %v513_v43 = vadd.f32 %v512_v60, %v492_v24  ;;  %v1527_v24 = vld [vmem:[%s2539_s10] sm:$0xf]  ;;  %v1585_v60 = vld [vmem:[%s2539_s10 + $0x4] sm:$0xf0] }
 0x21d   :  { %v2210_v57 = vor.u32 %v1585_v60, %v1527_v24 }
 0x21e   :  { %v533_v27 = vadd.f32 %v532_v25, %v513_v43  ;;  %v2201_v43 = vor.u32 %v1586_v10, %v1537_v44 }
 0x220   :  { %v553_v41 = vadd.f32 %v552_v26, %v533_v27  ;;  %v1584_v26 = vld [vmem:[%s2539_s10 + $0x4] sm:$0xf]  ;;  %v1529_v27 = vld [vmem:[%s2539_s10 + $0x8] sm:$0xf0]  ;;  %901 = vmatpush.bf16.msrb.mxu1 %v2201_v43 }
 0x221   :  { %v2214_v28 = vor.u32 %v1584_v26, %v1529_v27 }
 0x222   :  { %1506 = vmatmul.msk.f32.vlgmr.msra.gmra.mxu2 %vm561_vm3, %v553_v41 }
 0x223   :  { %990 = vmatpush.bf16.msra.mxu2 %v2144_v17 }
 0x224   :  { %902 = vmatpush.bf16.msrb.mxu1 %v2214_v28 }
 0x227   :  { %991 = vmatpush.bf16.msra.mxu2 %v2166_v21 }
 0x22a   :  { %1509 = vmatmul.msk.f32.vlgmr.msrb.gmra.mxu2 %vm600_vm4, %v646_v55 }
 0x22b   :  { %992 = vmatpush.bf16.msra.mxu2 %v2189_v18 }
 0x22f   :  { %993 = vmatpush.bf16.msra.mxu2 %v2210_v57 }
 0x232   :  { %1510 = vmatmul.msk.f32.gmra.mxu2 %vm600_vm4, %v647_v11 }
 0x233   :  { %1055 = vmatpush.bf16.msrb.mxu2 %v2157_v20 }
 0x237   :  { %1056 = vmatpush.bf16.msrb.mxu2 %v2171_v22 }
 0x23a   :  { %1511 = vmatmul.msk.f32.gmra.mxu2 %vm600_vm4, %v648_v13 }
 0x23b   :  { %1057 = vmatpush.bf16.msrb.mxu2 %v2201_v43 }
 0x23f   :  { %1058 = vmatpush.bf16.msrb.mxu2 %v2214_v28 }
 0x242   :  { %1512 = vmatmul.msk.f32.gmra.mxu2 %vm600_vm4, %v649_v45 }
 0x24a   :  { %1513 = vmatmul.msk.f32.gmra.mxu2 %vm600_vm4, %v650_v30 }
 0x252   :  { %1514 = vmatmul.msk.f32.gmra.mxu2 %vm600_vm4, %v651_v31 }
 0x25a   :  { %1515 = vmatmul.msk.f32.gmra.mxu2 %vm600_vm4, %v652_v54 }
 0x262   :  { %1516 = vmatmul.msk.f32.gmra.mxu2 %vm600_vm4, %v653_v39 }
 0x2a5   :  { %v582_v33 = vpop.f32.mrf.mxu2 }
 0x2a6   :  { %v583_v34 = vadd.f32 %v1603_v32, %v582_v33  ;;  %v654_v33 = vld [vmem:[%s2540_s9] sm:$0x3] }
 0x2a8   :  { %v585_v35 = vmax.f32 %v583_v34, 0.0  ;;  %v2255_v34 = vperm.slane %v654_v33, 1 }
 0x2aa   :  { %1507 = vmatmul.msk.f32.vlgmr.msra.gmra.mxu3 %vm600_vm4, %v585_v35  ;;  %1508 = vmatmul.msk.f32.vlgmr.msra.gmra.mxu1 %vm600_vm4, %v585_v35 }
 0x2ab   :  { %886 = vmatpush.bf16.msra.mxu3 %v2144_v17  ;;  %938 = vmatpush.bf16.msra.mxu1 %v2144_v17 }
 0x2af   :  { %887 = vmatpush.bf16.msra.mxu3 %v2166_v21  ;;  %939 = vmatpush.bf16.msra.mxu1 %v2166_v21 }
 0x2b2   :  { %1517 = vmatmul.msk.f32.vlgmr.msrb.gmra.mxu3 %vm600_vm4, %v646_v55 }
 0x2b3   :  { %888 = vmatpush.bf16.msra.mxu3 %v2189_v18  ;;  %940 = vmatpush.bf16.msra.mxu1 %v2189_v18 }
 0x2b7   :  { %889 = vmatpush.bf16.msra.mxu3 %v2210_v57  ;;  %941 = vmatpush.bf16.msra.mxu1 %v2210_v57 }
 0x2ba   :  { %1518 = vmatmul.msk.f32.gmra.mxu3 %vm600_vm4, %v647_v11 }
 0x2bb   :  { %1003 = vmatpush.bf16.msrb.mxu3 %v2157_v20 }
 0x2bf   :  { %1004 = vmatpush.bf16.msrb.mxu3 %v2171_v22 }
 0x2c2   :  { %1519 = vmatmul.msk.f32.gmra.mxu3 %vm600_vm4, %v648_v13 }
 0x2c3   :  { %1005 = vmatpush.bf16.msrb.mxu3 %v2201_v43 }
 0x2c7   :  { %1006 = vmatpush.bf16.msrb.mxu3 %v2214_v28 }
 0x2ca   :  { %1520 = vmatmul.msk.f32.gmra.mxu3 %vm600_vm4, %v649_v45 }
 0x2d2   :  { %1521 = vmatmul.msk.f32.gmra.mxu3 %vm600_vm4, %v650_v30 }
 0x2da   :  { %1522 = vmatmul.msk.f32.gmra.mxu3 %vm600_vm4, %v651_v31 }
 0x2e2   :  { %1523 = vmatmul.msk.f32.gmra.mxu3 %vm600_vm4, %v652_v54 }
 0x2ea   :  { %1524 = vmatmul.msk.f32.gmra.mxu3 %vm600_vm4, %v653_v39 }
 0x327   :  { %v641_v46 = vpop.f32.mrf.mxu1 }
 0x328   :  { %v642_v53 = vadd.f32 %v641_v46, %v597_v42 }
 0x32a   :  { %v816_v59 = vmul.f32 %v2112_v50, %v642_v53 }
 0x32c   :  { %1605 = vtanh.f32 %v816_v59 }
 0x32d   :  { %v621_v63 = vpop.f32.mrf.mxu3 }
 0x32e   :  { %v622_v1 = vadd.f32 %v621_v63, %v596_v56 }
 0x330   :  { %v815_v61 = vmul.f32 0.5, %v622_v1 }
 0x332   :  { %1607 = vtanh.f32 %v815_v61  ;;  %v1606_v2 = vpop.eup %1605 }
 0x333   :  { %v820_v62 = vmul.f32 %v1606_v2, %v2112_v50 }
 0x335   :  { %v822_v7 = vadd.f32 %v820_v62, %v2116_v5  ;;  %v742_v32 = vpop.f32.mrf.mxu3  ;;  %v2288_v62 = vperm.slane %v654_v33, 0 }
 0x336   :  { %v743_v2 = vadd.f32 %v742_v32, %v2255_v34 }
 0x338   :  { %v1608_v3 = vpop.eup %1607 }
 0x339   :  { %v819_v6 = vmul.f32 0.5, %v1608_v3 }
 0x33b   :  { %v821_v58 = vadd.f32 0.5, %v819_v6  ;;  %v701_v6 = vpop.f32.mrf.mxu2 }
 0x33d   :  { %v824_v9 = vmul.f32 %v822_v7, %v821_v58  ;;  %v823_v52 = vmul.f32 0.0, %v821_v58  ;;  %v745_v35 = vpop.f32.mrf.mxu3 }
 0x33e   :  { %v2258_v36 = vadd.f32 %v745_v35, %v2255_v34 }
 0x33f   :  { %826 = vrot.lane.b32.xlu0 %v824_v9, %s1666_s5  ;;  %v702_v9 = vadd.f32 %v701_v6, %v2288_v62 }
 0x343   :  { %v704_v60 = vpop.f32.mrf.mxu2 }
 0x345   :  { %v748_v38 = vpop.f32.mrf.mxu3 }
 0x346   :  { %v2265_v40 = vadd.f32 %v748_v38, %v2255_v34 }
 0x34d   :  { %v751_v42 = vpop.f32.mrf.mxu3 }
 0x34e   :  { %v2272_v46 = vadd.f32 %v751_v42, %v2255_v34 }
 0x355   :  { %v754_v48 = vpop.f32.mrf.mxu3 }
 0x356   :  { %v2277_v53 = vadd.f32 %v754_v48, %v2255_v34 }
 0x35d   :  { %v757_v56 = vpop.f32.mrf.mxu3 }
 0x35e   :  { %v2280_v59 = vadd.f32 %v757_v56, %v2255_v34 }
 0x365   :  { %v760_v63 = vpop.f32.mrf.mxu3 }
 0x366   :  { %v2283_v1 = vadd.f32 %v760_v63, %v2255_v34 }
 0x36d   :  { %v2285_v61 = vpop.f32.mrf.mxu3 }
 0x3b1   :  { %v827_v16 = vpop.permute.xlu0 %826 }
 0x3b2   :  { %v2155_v4 = vadd.f32 %v827_v16, %v823_v52 }
 0x3b4   :  { %1609 = vtanh.f32 %v2155_v4 }
 0x3ba   :  { %v1610_v25 = vpop.eup %1609 }
 0x3bb   :  { %v831_v41 = vmul.f32 %v1610_v25, %v822_v7  ;;  %v705_v25 = vadd.f32 %v704_v60, %v2288_v62 }
 0x3bd   :  { %v832_v29 = vpack.c.bf16 %v831_v41, %v831_v41 }
 0x3bf   :  { %836 = vrot.lane.b32.xlu0 %v832_v29, %s1666_s5 }
 0x431   :  { %v837_v37 = vpop.permute.xlu0 %836 }
 0x432   :  { %1557 = vmatmul.msk.bf16.vlgmr.msra.gmra.mxu3 %vm878_vm6, %v837_v37  ;;  %1558 = vmatmul.msk.bf16.vlgmr.msrb.gmra.mxu1 %vm878_vm6, %v837_v37 }
 0x433   :  { %951 = vmatpush.bf16.msrb.mxu1 %v2157_v20  ;;  %1094 = vmatpush.bf16.msra.mxu3 %v2144_v17 }
 0x437   :  { %952 = vmatpush.bf16.msrb.mxu1 %v2171_v22  ;;  %1095 = vmatpush.bf16.msra.mxu3 %v2166_v21 }
 0x43b   :  { %953 = vmatpush.bf16.msrb.mxu1 %v2201_v43  ;;  %1096 = vmatpush.bf16.msra.mxu3 %v2189_v18 }
 0x43f   :  { %954 = vmatpush.bf16.msrb.mxu1 %v2214_v28  ;;  %1097 = vmatpush.bf16.msra.mxu3 %v2210_v57 }
 0x4af   :  { %v904_v3 = vpop.f32.mrf.mxu1 }
 0x4b0   :  { %v905_v58 = vadd.f32 %v904_v3, %v743_v2 }
 0x4b2   :  { %v909_v7 = vmul.f32 %v905_v58, %v2112_v50  ;;  %v707_v58 = vpop.f32.mrf.mxu2 }
 0x4b4   :  { %1611 = vtanh.f32 %v909_v7 }
 0x4b5   :  { %v891_v55 = vpop.f32.mrf.mxu3 }
 0x4b6   :  { %v892_v11 = vadd.f32 %v891_v55, %v702_v9 }
 0x4b7   :  { %v906_v13 = vpop.f32.mrf.mxu1 }
 0x4b8   :  { %v908_v52 = vmul.f32 0.5, %v892_v11 }
 0x4ba   :  { %1613 = vtanh.f32 %v908_v52  ;;  %v1612_v14 = vpop.eup %1611  ;;  %v710_v7 = vpop.f32.mrf.mxu2  ;;  %v708_v52 = vadd.f32 %v707_v58, %v2288_v62 }
 0x4bb   :  { %v913_v49 = vmul.f32 %v1612_v14, %v2112_v50 }
 0x4bd   :  { %v893_v15 = vpop.f32.mrf.mxu3  ;;  %v915_v19 = vadd.f32 %v913_v49, %v2116_v5 }
 0x4c0   :  { %v1614_v16 = vpop.eup %1613 }
 0x4c1   :  { %v912_v8 = vmul.f32 0.5, %v1614_v16 }
 0x4c2   :  { %v2332_v9 = vpop.f32.mrf.mxu2 }
 0x4c3   :  { %v914_v12 = vadd.f32 0.5, %v912_v8 }
 0x4c5   :  { %v917_v47 = vmul.f32 %v915_v19, %v914_v12  ;;  %v916_v51 = vmul.f32 %v914_v12, %v2155_v4 }
 0x4c7   :  { %919 = vrot.lane.b32.xlu1 %v917_v47, %s1666_s5 }
 0x4ca   :  { %v2334_v55 = vpop.f32.mrf.mxu2 }
 0x4d2   :  { %v2336_v11 = vpop.f32.mrf.mxu2 }
 0x4da   :  { %v2338_v13 = vpop.f32.mrf.mxu2 }
 0x539   :  { %v920_v45 = vpop.permute.xlu1 %919 }
 0x53a   :  { %v922_v0 = vadd.f32 %v920_v45, %v916_v51 }
 0x53c   :  { %1615 = vtanh.f32 %v922_v0 }
 0x542   :  { %v1616_v23 = vpop.eup %1615 }
 0x543   :  { %v2296_v10 = vmul.f32 %v1616_v23, %v915_v19 }
 0x545   :  { %v925_v44 = vpack.c.bf16 %v2296_v10, %v2296_v10 }
 0x547   :  { %929 = vrot.lane.b32.xlu1 %v925_v44, %s1666_s5 }
 0x5b9   :  { %v930_v24 = vpop.permute.xlu1 %929 }
 0x5ba   :  { %1559 = vmatmul.msk.bf16.vlgmr.msra.gmra.mxu1 %vm878_vm6, %v930_v24 }
 0x5bb   :  { %1042 = vmatpush.bf16.msra.mxu1 %v2144_v17 }
 0x5bf   :  { %1043 = vmatpush.bf16.msra.mxu1 %v2166_v21 }
 0x5c3   :  { %1044 = vmatpush.bf16.msra.mxu1 %v2189_v18 }
 0x5c7   :  { %1045 = vmatpush.bf16.msra.mxu1 %v2210_v57 }
 0x5ca   :  { %1560 = vmatmul.msk.bf16.vlgmr.msrb.gmra.mxu1 %vm878_vm6, %v930_v24 }
 0x5cb   :  { %1107 = vmatpush.bf16.msrb.mxu1 %v2157_v20 }
 0x5cf   :  { %1108 = vmatpush.bf16.msrb.mxu1 %v2171_v22 }
 0x5d3   :  { %1109 = vmatpush.bf16.msrb.mxu1 %v2201_v43 }
 0x5d7   :  { %1110 = vmatpush.bf16.msrb.mxu1 %v2214_v28 }
 0x637   :  { %v943_v4 = vpop.f32.mrf.mxu1 }
 0x638   :  { %v944_v27 = vadd.f32 %v943_v4, %v705_v25 }
 0x63a   :  { %v960_v41 = vmul.f32 0.5, %v944_v27 }
 0x63c   :  { %1617 = vtanh.f32 %v960_v41 }
 0x63f   :  { %v945_v26 = vpop.f32.mrf.mxu1 }
 0x642   :  { %v1618_v54 = vpop.eup %1617 }
 0x643   :  { %v964_v32 = vmul.f32 0.5, %v1618_v54 }
 0x645   :  { %v966_v37 = vadd.f32 0.5, %v964_v32 }
 0x647   :  { %v956_v29 = vpop.f32.mrf.mxu1  ;;  %v968_v48 = vmul.f32 %v966_v37, %v922_v0 }
 0x648   :  { %v957_v30 = vadd.f32 %v956_v29, %v2258_v36 }
 0x64a   :  { %v961_v31 = vmul.f32 %v957_v30, %v2112_v50  ;;  %v711_v30 = vadd.f32 %v710_v7, %v2288_v62 }
 0x64c   :  { %1619 = vtanh.f32 %v961_v31 }
 0x64f   :  { %v958_v39 = vpop.f32.mrf.mxu1 }
 0x652   :  { %v1620_v33 = vpop.eup %1619 }
 0x653   :  { %v965_v35 = vmul.f32 %v1620_v33, %v2112_v50 }
 0x655   :  { %v967_v38 = vadd.f32 %v965_v35, %v2116_v5 }
 0x657   :  { %v969_v42 = vmul.f32 %v967_v38, %v966_v37 }
 0x659   :  { %971 = vrot.lane.b32.xlu2 %v969_v42, %s1666_s5 }
 0x6b3   :  { %v972_v56 = vpop.permute.xlu2 %971 }
 0x6b4   :  { %v974_v63 = vadd.f32 %v972_v56, %v968_v48 }
 0x6b6   :  { %1621 = vtanh.f32 %v974_v63 }
 0x6bc   :  { %v1622_v36 = vpop.eup %1621 }
 0x6bd   :  { %v2317_v2 = vmul.f32 %v1622_v36, %v967_v38 }
 0x6bf   :  { %v977_v3 = vpack.c.bf16 %v2317_v2, %v2317_v2 }
 0x6c1   :  { %981 = vrot.lane.b32.xlu2 %v977_v3, %s1666_s5 }
 0x71b   :  { %v982_v6 = vpop.permute.xlu2 %981 }
 0x71c   :  { %1561 = vmatmul.msk.bf16.vlgmr.msra.gmra.mxu2 %vm878_vm6, %v982_v6  ;;  %1562 = vmatmul.msk.bf16.vlgmr.msrb.gmra.mxu3 %vm878_vm6, %v982_v6 }
 0x71d   :  { %1146 = vmatpush.bf16.msra.mxu2 %v2144_v17  ;;  %1159 = vmatpush.bf16.msrb.mxu3 %v2157_v20 }
 0x721   :  { %1147 = vmatpush.bf16.msra.mxu2 %v2166_v21  ;;  %1160 = vmatpush.bf16.msrb.mxu3 %v2171_v22 }
 0x725   :  { %1148 = vmatpush.bf16.msra.mxu2 %v2189_v18  ;;  %1161 = vmatpush.bf16.msrb.mxu3 %v2201_v43 }
 0x729   :  { %1149 = vmatpush.bf16.msra.mxu2 %v2210_v57  ;;  %1162 = vmatpush.bf16.msrb.mxu3 %v2214_v28 }
 0x79f   :  { %v995_v14 = vpop.f32.mrf.mxu2  ;;  %v1008_v15 = vpop.f32.mrf.mxu3 }
 0x7a0   :  { %v996_v49 = vadd.f32 %v995_v14, %v708_v52  ;;  %v1009_v16 = vadd.f32 %v1008_v15, %v2265_v40 }
 0x7a2   :  { %v1012_v8 = vmul.f32 0.5, %v996_v49  ;;  %v1013_v12 = vmul.f32 %v1009_v16, %v2112_v50 }
 0x7a4   :  { %1623 = vtanh.f32 %v1012_v8 }
 0x7a5   :  { %1625 = vtanh.f32 %v1013_v12 }
 0x7a7   :  { %v997_v19 = vpop.f32.mrf.mxu2  ;;  %v1010_v47 = vpop.f32.mrf.mxu3 }
 0x7a8   :  { %v714_v19 = vadd.f32 %v2332_v9, %v2288_v62 }
 0x7aa   :  { %v1624_v51 = vpop.eup %1623 }
 0x7ab   :  { %v1626_v45 = vpop.eup %1625  ;;  %v1016_v0 = vmul.f32 0.5, %v1624_v51 }
 0x7ac   :  { %v1017_v23 = vmul.f32 %v1626_v45, %v2112_v50 }
 0x7ad   :  { %v1018_v44 = vadd.f32 0.5, %v1016_v0 }
 0x7ae   :  { %v1019_v24 = vadd.f32 %v1017_v23, %v2116_v5 }
 0x7af   :  { %v1020_v60 = vmul.f32 %v1018_v44, %v974_v63 }
 0x7b0   :  { %v1021_v4 = vmul.f32 %v1019_v24, %v1018_v44 }
 0x7b2   :  { %1023 = vrot.lane.b32.xlu0 %v1021_v4, %s1666_s5 }
 0x824   :  { %v1024_v40 = vpop.permute.xlu0 %1023 }
 0x825   :  { %v1026_v25 = vadd.f32 %v1024_v40, %v1020_v60 }
 0x827   :  { %1627 = vtanh.f32 %v1026_v25 }
 0x82d   :  { %v1628_v26 = vpop.eup %1627 }
 0x82e   :  { %v2346_v27 = vmul.f32 %v1628_v26, %v1019_v24 }
 0x830   :  { %v1029_v41 = vpack.c.bf16 %v2346_v27, %v2346_v27 }
 0x832   :  { %1033 = vrot.lane.b32.xlu1 %v1029_v41, %s1666_s5 }
 0x8a4   :  { %v1034_v29 = vpop.permute.xlu1 %1033 }
 0x8a5   :  { %1563 = vmatmul.msk.bf16.vlgmr.msra.gmra.mxu1 %vm878_vm6, %v1034_v29  ;;  %1564 = vmatmul.msk.bf16.vlgmr.msrb.gmra.mxu2 %vm878_vm6, %v1034_v29 }
 0x8a6   :  { %1198 = vmatpush.bf16.msra.mxu1 %v2144_v17  ;;  %1211 = vmatpush.bf16.msrb.mxu2 %v2157_v20 }
 0x8aa   :  { %1199 = vmatpush.bf16.msra.mxu1 %v2166_v21  ;;  %1212 = vmatpush.bf16.msrb.mxu2 %v2171_v22 }
 0x8ae   :  { %1200 = vmatpush.bf16.msra.mxu1 %v2189_v18  ;;  %1213 = vmatpush.bf16.msrb.mxu2 %v2201_v43 }
 0x8b2   :  { %1201 = vmatpush.bf16.msra.mxu1 %v2210_v57  ;;  %1214 = vmatpush.bf16.msrb.mxu2 %v2214_v28 }
 0x922   :  { %v1047_v31 = vpop.f32.mrf.mxu1 }
 0x923   :  { %v1048_v54 = vadd.f32 %v1047_v31, %v711_v30 }
 0x925   :  { %v1064_v39 = vmul.f32 0.5, %v1048_v54 }
 0x927   :  { %1629 = vtanh.f32 %v1064_v39  ;;  %v717_v39 = vadd.f32 %v2334_v55, %v2288_v62 }
 0x928   :  { %v1060_v32 = vpop.f32.mrf.mxu2 }
 0x929   :  { %v1061_v33 = vadd.f32 %v1060_v32, %v2272_v46 }
 0x92a   :  { %v1049_v35 = vpop.f32.mrf.mxu1 }
 0x92b   :  { %v1065_v37 = vmul.f32 %v1061_v33, %v2112_v50 }
 0x92d   :  { %1631 = vtanh.f32 %v1065_v37  ;;  %v1630_v38 = vpop.eup %1629 }
 0x92e   :  { %v1068_v48 = vmul.f32 0.5, %v1630_v38 }
 0x930   :  { %v1062_v42 = vpop.f32.mrf.mxu2  ;;  %v1070_v36 = vadd.f32 0.5, %v1068_v48 }
 0x932   :  { %v1072_v58 = vmul.f32 %v1070_v36, %v1026_v25 }
 0x933   :  { %v1632_v56 = vpop.eup %1631 }
 0x934   :  { %v1069_v63 = vmul.f32 %v1632_v56, %v2112_v50 }
 0x936   :  { %v1071_v3 = vadd.f32 %v1069_v63, %v2116_v5 }
 0x938   :  { %v1073_v6 = vmul.f32 %v1071_v3, %v1070_v36 }
 0x93a   :  { %1075 = vrot.lane.b32.xlu2 %v1073_v6, %s1666_s5 }
 0x994   :  { %v1076_v7 = vpop.permute.xlu2 %1075 }
 0x995   :  { %v1078_v52 = vadd.f32 %v1076_v7, %v1072_v58  ;;  %v720_v58 = vadd.f32 %v2336_v11, %v2288_v62 }
 0x997   :  { %1633 = vtanh.f32 %v1078_v52 }
 0x99d   :  { %v1634_v46 = vpop.eup %1633 }
 0x99e   :  { %v2367_v14 = vmul.f32 %v1634_v46, %v1071_v3 }
 0x9a0   :  { %v1081_v15 = vpack.c.bf16 %v2367_v14, %v2367_v14 }
 0x9a2   :  { %1085 = vrot.lane.b32.xlu0 %v1081_v15, %s1666_s5 }
 0xa14   :  { %v1086_v49 = vpop.permute.xlu0 %1085 }
 0xa15   :  { %1565 = vmatmul.msk.bf16.vlgmr.msra.gmra.mxu3 %vm878_vm6, %v1086_v49  ;;  %1566 = vmatmul.msk.bf16.vlgmr.msrb.gmra.mxu1 %vm878_vm6, %v1086_v49 }
 0xa16   :  { %1250 = vmatpush.bf16.msra.mxu3 %v2144_v17  ;;  %1263 = vmatpush.bf16.msrb.mxu1 %v2157_v20 }
 0xa1a   :  { %1251 = vmatpush.bf16.msra.mxu3 %v2166_v21  ;;  %1264 = vmatpush.bf16.msrb.mxu1 %v2171_v22 }
 0xa1e   :  { %1252 = vmatpush.bf16.msra.mxu3 %v2189_v18  ;;  %1265 = vmatpush.bf16.msrb.mxu1 %v2201_v43 }
 0xa22   :  { %1253 = vmatpush.bf16.msra.mxu3 %v2210_v57  ;;  %1266 = vmatpush.bf16.msrb.mxu1 %v2214_v28 }
 0xa92   :  { %v1112_v16 = vpop.f32.mrf.mxu1 }
 0xa93   :  { %v1113_v8 = vadd.f32 %v1112_v16, %v2277_v53 }
 0xa95   :  { %v1117_v12 = vmul.f32 %v1113_v8, %v2112_v50 }
 0xa97   :  { %1635 = vtanh.f32 %v1117_v12 }
 0xa98   :  { %v1099_v47 = vpop.f32.mrf.mxu3 }
 0xa99   :  { %v1100_v51 = vadd.f32 %v1099_v47, %v714_v19 }
 0xa9a   :  { %v1114_v45 = vpop.f32.mrf.mxu1 }
 0xa9b   :  { %v1116_v0 = vmul.f32 0.5, %v1100_v51 }
 0xa9d   :  { %1637 = vtanh.f32 %v1116_v0  ;;  %v1636_v23 = vpop.eup %1635 }
 0xa9e   :  { %v1121_v24 = vmul.f32 %v1636_v23, %v2112_v50 }
 0xaa0   :  { %v1101_v44 = vpop.f32.mrf.mxu3  ;;  %v1123_v53 = vadd.f32 %v1121_v24, %v2116_v5 }
 0xaa3   :  { %v1638_v4 = vpop.eup %1637 }
 0xaa4   :  { %v1120_v60 = vmul.f32 0.5, %v1638_v4 }
 0xaa6   :  { %v1122_v40 = vadd.f32 0.5, %v1120_v60 }
 0xaa8   :  { %v1125_v25 = vmul.f32 %v1123_v53, %v1122_v40  ;;  %v1124_v26 = vmul.f32 %v1122_v40, %v1078_v52 }
 0xaaa   :  { %1127 = vrot.lane.b32.xlu1 %v1125_v25, %s1666_s5  ;;  %v1347_v25 = vld [vmem:[%s2541_s11 + $0x30] sm:$0xff] }
 0xb1c   :  { %v1128_v9 = vpop.permute.xlu1 %1127 }
 0xb1d   :  { %v1130_v41 = vadd.f32 %v1128_v9, %v1124_v26  ;;  %v1346_v26 = vld [vmem:[%s2541_s11 + $0x28] sm:$0xff]  ;;  %v1343_v9 = vld [vmem:[%s2541_s11 + $0x10] sm:$0xff] }
 0xb1f   :  { %1639 = vtanh.f32 %v1130_v41 }
 0xb25   :  { %v1640_v29 = vpop.eup %1639 }
 0xb26   :  { %v2389_v30 = vmul.f32 %v1640_v29, %v1123_v53  ;;  %v1348_v53 = vld [vmem:[%s2541_s11 + $0x38] sm:$0xff]  ;;  %v1341_v29 = vld [vmem:[%s2541_s11] sm:$0xff] }
 0xb28   :  { %v1133_v31 = vpack.c.bf16 %v2389_v30, %v2389_v30 }
 0xb2a   :  { %1137 = vrot.lane.b32.xlu2 %v1133_v31, %s1666_s5 }
 0xb84   :  { %v1138_v54 = vpop.permute.xlu2 %1137 }
 0xb85   :  { %1567 = vmatmul.msk.bf16.vlgmr.msra.gmra.mxu2 %vm878_vm6, %v1138_v54  ;;  %1568 = vmatmul.msk.bf16.vlgmr.msrb.gmra.mxu3 %vm878_vm6, %v1138_v54 }
 0xb86   :  { %1302 = vmatpush.bf16.msra.mxu2 %v2144_v17  ;;  %1315 = vmatpush.bf16.msrb.mxu3 %v2157_v20 }
 0xb8a   :  { %1303 = vmatpush.bf16.msra.mxu2 %v2166_v21  ;;  %1316 = vmatpush.bf16.msrb.mxu3 %v2171_v22 }
 0xb8e   :  { %1304 = vmatpush.bf16.msra.mxu2 %v2189_v18  ;;  %1317 = vmatpush.bf16.msrb.mxu3 %v2201_v43 }
 0xb92   :  { %1305 = vmatpush.bf16.msra.mxu2 %v2210_v57  ;;  %1318 = vmatpush.bf16.msrb.mxu3 %v2214_v28 }
 0xc08   :  { %v1151_v32 = vpop.f32.mrf.mxu2  ;;  %v1164_v33 = vpop.f32.mrf.mxu3 }
 0xc09   :  { %v1152_v17 = vadd.f32 %v1151_v32, %v717_v39  ;;  %v1165_v20 = vadd.f32 %v1164_v33, %v2280_v59  ;;  %v764_v39 = vadd.f32 %v2285_v61, %v2255_v34 }
 0xc0b   :  { %v1168_v35 = vmul.f32 0.5, %v1152_v17  ;;  %v1169_v21 = vmul.f32 %v1165_v20, %v2112_v50  ;;  %v723_v20 = vadd.f32 %v2338_v13, %v2288_v62 }
 0xc0d   :  { %1641 = vtanh.f32 %v1168_v35 }
 0xc0e   :  { %1643 = vtanh.f32 %v1169_v21 }
 0xc10   :  { %v1153_v22 = vpop.f32.mrf.mxu2  ;;  %v1166_v18 = vpop.f32.mrf.mxu3 }
 0xc13   :  { %v1642_v43 = vpop.eup %1641 }
 0xc14   :  { %v1644_v37 = vpop.eup %1643  ;;  %v1172_v57 = vmul.f32 0.5, %v1642_v43 }
 0xc15   :  { %v1173_v28 = vmul.f32 %v1644_v37, %v2112_v50  ;;  %v2462_v37 = vld [vmem:[%s2542_s12] ss:$0 sm:$0xff] }
 0xc16   :  { %v1174_v38 = vadd.f32 0.5, %v1172_v57 }
 0xc17   :  { %v1175_v55 = vadd.f32 %v1173_v28, %v2116_v5 }
 0xc18   :  { %v1176_v48 = vmul.f32 %v1174_v38, %v1130_v41  ;;  %v1342_v41 = vld [vmem:[%s2541_s11 + $0x8] sm:$0xff] }
 0xc19   :  { %v1177_v42 = vmul.f32 %v1175_v55, %v1174_v38 }
 0xc1b   :  { %1179 = vrot.lane.b32.xlu0 %v1177_v42, %s1666_s5 }
 0xc8d   :  { %v1180_v59 = vpop.permute.xlu0 %1179 }
 0xc8e   :  { %v1182_v56 = vadd.f32 %v1180_v59, %v1176_v48 }
 0xc90   :  { %1645 = vtanh.f32 %v1182_v56 }
 0xc96   :  { %v1646_v63 = vpop.eup %1645 }
 0xc97   :  { %v1184_v36 = vmul.f32 %v1646_v63, %v1175_v55 }
 0xc99   :  { %v1185_v3 = vpack.c.bf16 %v1184_v36, %v1184_v36 }
 0xc9b   :  { %1189 = vrot.lane.b32.xlu1 %v1185_v3, %s1666_s5 }
 0xd0d   :  { %v1190_v6 = vpop.permute.xlu1 %1189 }
 0xd0e   :  { %1569 = vmatmul.msk.bf16.vlgmr.msra.gmra.mxu1 %vm878_vm6, %v1190_v6  ;;  %1570 = vmatmul.msk.bf16.vlgmr.msrb.gmra.mxu2 %vm878_vm6, %v1190_v6 }
 0xd0f   :  { %1406 = vmatpush.msra.mxu1 %v1348_v53 }
 0xd11   :  { %1407 = vmatpush.msra.mxu1 %v1347_v25 }
 0xd13   :  { %1408 = vmatpush.msra.mxu1 %v1346_v26 }
 0xd8b   :  { %v1203_v7 = vpop.f32.mrf.mxu1 }
 0xd8c   :  { %v1204_v52 = vadd.f32 %v1203_v7, %v720_v58 }
 0xd8e   :  { %v1220_v46 = vmul.f32 0.5, %v1204_v52 }
 0xd90   :  { %1647 = vtanh.f32 %v1220_v46 }
 0xd91   :  { %v1216_v15 = vpop.f32.mrf.mxu2 }
 0xd92   :  { %v1217_v49 = vadd.f32 %v1216_v15, %v2283_v1 }
 0xd93   :  { %v1205_v16 = vpop.f32.mrf.mxu1 }
 0xd94   :  { %v1221_v8 = vmul.f32 %v1217_v49, %v2112_v50 }
 0xd96   :  { %1649 = vtanh.f32 %v1221_v8  ;;  %v1648_v12 = vpop.eup %1647  ;;  %v782_v8 = vld [vmem:[%s2540_s9] sm:$0x3] }
 0xd97   :  { %v1224_v47 = vmul.f32 0.5, %v1648_v12  ;;  %v784_v12 = vperm.slane %v782_v8, 0 }
 0xd99   :  { %v1218_v19 = vpop.f32.mrf.mxu2  ;;  %v1226_v0 = vadd.f32 0.5, %v1224_v47 }
 0xd9a   :  { %v785_v19 = vperm.slane %v782_v8, 1 }
 0xd9b   :  { %v1228_v44 = vmul.f32 %v1226_v0, %v1182_v56 }
 0xd9c   :  { %v1650_v51 = vpop.eup %1649 }
 0xd9d   :  { %v1225_v45 = vmul.f32 %v1650_v51, %v2112_v50 }
 0xd9f   :  { %v1227_v11 = vadd.f32 %v1225_v45, %v2116_v5 }
 0xda1   :  { %v1229_v23 = vmul.f32 %v1227_v11, %v1226_v0 }
 0xda3   :  { %1231 = vrot.lane.b32.xlu2 %v1229_v23, %s1666_s5 }
 0xdfd   :  { %v1232_v24 = vpop.permute.xlu2 %1231 }
 0xdfe   :  { %v1234_v4 = vadd.f32 %v1232_v24, %v1228_v44 }
 0xe00   :  { %1651 = vtanh.f32 %v1234_v4 }
 0xe06   :  { %v1652_v1 = vpop.eup %1651 }
 0xe07   :  { %v1236_v60 = vmul.f32 %v1652_v1, %v1227_v11 }
 0xe09   :  { %v1237_v40 = vpack.c.bf16 %v1236_v60, %v1236_v60 }
 0xe0b   :  { %1241 = vrot.lane.b32.xlu0 %v1237_v40, %s1666_s5 }
 0xe13   :  { %1362 = vrot.lane.b32.xlu0 %v2296_v10, %s1666_s5  ;;  %v1345_v10 = vld [vmem:[%s2541_s11 + $0x20] sm:$0xff] }
 0xe14   :  { %1409 = vmatpush.msra.mxu1 %v1345_v10 }
 0xe1b   :  { %1366 = vrot.lane.b32.xlu0 %v2346_v27, %s1666_s5  ;;  %v1344_v27 = vld [vmem:[%s2541_s11 + $0x18] sm:$0xff] }
 0xe1c   :  { %1410 = vmatpush.msra.mxu1 %v1344_v27 }
 0xe1e   :  { %1411 = vmatpush.msra.mxu1 %v1343_v9 }
 0xe20   :  { %1412 = vmatpush.msra.mxu1 %v1342_v41 }
 0xe22   :  { %1413 = vmatpush.msra.mxu1 %v1341_v29 }
 0xe23   :  { %1372 = vrot.lane.b32.xlu0 %v1184_v36, %s1666_s5 }
 0xe7d   :  { %v1242_v31 = vpop.permute.xlu0 %1241 }
 0xe7e   :  { %1571 = vmatmul.msk.bf16.vlgmr.msra.gmra.mxu3 %vm878_vm6, %v1242_v31  ;;  %1572 = vmatmul.msk.bf16.vlgmr.msrb.gmra.mxu1 %vm878_vm6, %v1242_v31 }
 0xe85   :  { %v1363_v54 = vpop.permute.xlu0 %1362 }
 0xe8d   :  { %v1367_v58 = vpop.permute.xlu0 %1366 }
 0xe8e   :  { %1575 = vmatmul.msk.f32.vlgmr.msra.gmra.mxu1 %vm878_vm6, %v1363_v54 }
 0xefb   :  { %v1268_v32 = vpop.f32.mrf.mxu1 }
 0xefc   :  { %v1269_v33 = vadd.f32 %v1268_v32, %v764_v39 }
 0xefe   :  { %v1273_v17 = vmul.f32 %v1269_v33, %v2112_v50 }
 0xf00   :  { %1653 = vtanh.f32 %v1273_v17 }
 0xf01   :  { %v1255_v35 = vpop.f32.mrf.mxu3 }
 0xf02   :  { %v1256_v21 = vadd.f32 %v1255_v35, %v723_v20 }
 0xf03   :  { %v1270_v22 = vpop.f32.mrf.mxu1 }
 0xf04   :  { %v1272_v18 = vmul.f32 0.5, %v1256_v21 }
 0xf06   :  { %1655 = vtanh.f32 %v1272_v18  ;;  %v1654_v43 = vpop.eup %1653 }
 0xf07   :  { %v1277_v57 = vmul.f32 %v1654_v43, %v2112_v50 }
 0xf09   :  { %v1257_v34 = vpop.f32.mrf.mxu3  ;;  %v1279_v55 = vadd.f32 %v1277_v57, %v2116_v5 }
 0xf0b   :  { %v1415_v61 = vpop.f32.mrf.mxu1 }
 0xf0c   :  { %v1656_v28 = vpop.eup %1655  ;;  %v1416_v38 = vadd.f32 %v2462_v37, %v1415_v61 }
 0xf0d   :  { %v1276_v62 = vmul.f32 0.5, %v1656_v28 }
 0xf0e   :  { %1442 = vst [vmem:[%s2543_s13] sm:$0xff] %v1416_v38 }
 0xf0f   :  { %v1278_v13 = vadd.f32 0.5, %v1276_v62 }
 0xf11   :  { %v1281_v42 = vmul.f32 %v1279_v55, %v1278_v13  ;;  %v1280_v48 = vmul.f32 %v1278_v13, %v1234_v4 }
 0xf13   :  { %1283 = vrot.lane.b32.xlu1 %v1281_v42, %s1666_s5 }
 0xf1b   :  { %1364 = vrot.lane.b32.xlu1 %v2317_v2, %s1666_s5 }
 0xf23   :  { %1368 = vrot.lane.b32.xlu1 %v2367_v14, %s1666_s5 }
 0xf2b   :  { %1374 = vrot.lane.b32.xlu1 %v1236_v60, %s1666_s5 }
 0xf85   :  { %v1284_v59 = vpop.permute.xlu1 %1283 }
 0xf86   :  { %v1286_v56 = vadd.f32 %v1284_v59, %v1280_v48 }
 0xf88   :  { %1657 = vtanh.f32 %v1286_v56 }
 0xf8d   :  { %v1365_v63 = vpop.permute.xlu1 %1364 }
 0xf8e   :  { %v1658_v36 = vpop.eup %1657  ;;  %1576 = vmatmul.msk.f32.gmra.mxu1 %vm878_vm6, %v1365_v63 }
 0xf8f   :  { %v1288_v3 = vmul.f32 %v1658_v36, %v1279_v55 }
 0xf91   :  { %v1289_v6 = vpack.c.bf16 %v1288_v3, %v1288_v3 }
 0xf93   :  { %1293 = vrot.lane.b32.xlu2 %v1289_v6, %s1666_s5 }
 0xf95   :  { %v1369_v2 = vpop.permute.xlu1 %1368 }
 0xf96   :  { %1577 = vmatmul.msk.f32.gmra.mxu1 %vm878_vm6, %v1367_v58 }
 0xf9d   :  { %v1375_v31 = vpop.permute.xlu1 %1374 }
 0xf9e   :  { %1578 = vmatmul.msk.f32.gmra.mxu1 %vm878_vm6, %v1369_v2 }
 0xfed   :  { %v1294_v14 = vpop.permute.xlu2 %1293 }
 0xfee   :  { %1573 = vmatmul.msk.bf16.vlgmr.msra.gmra.mxu2 %vm878_vm6, %v1294_v14  ;;  %1574 = vmatmul.msk.bf16.vlgmr.msrb.gmra.mxu3 %vm878_vm6, %v1294_v14 }
0x100b   :  { %v1418_v7 = vpop.f32.mrf.mxu1 }
0x100c   :  { %v1419_v52 = vadd.f32 %v2462_v37, %v1418_v7 }
0x100e   :  { %1443 = vst [vmem:[%s2543_s13 + $0x8] sm:$0xff] %v1419_v52 }
0x1013   :  { %v1421_v46 = vpop.f32.mrf.mxu1 }
0x1014   :  { %v1422_v15 = vadd.f32 %v2462_v37, %v1421_v46 }
0x1016   :  { %1444 = vst [vmem:[%s2543_s13 + $0x10] sm:$0xff] %v1422_v15 }
0x101b   :  { %v1424_v49 = vpop.f32.mrf.mxu1 }
0x101c   :  { %v1425_v16 = vadd.f32 %v2462_v37, %v1424_v49 }
0x101e   :  { %1445 = vst [vmem:[%s2543_s13 + $0x18] sm:$0xff] %v1425_v16 }
0x1071   :  { %v1307_v47 = vpop.f32.mrf.mxu2  ;;  %v1320_v51 = vpop.f32.mrf.mxu3 }
0x1072   :  { %v1308_v45 = vadd.f32 %v1307_v47, %v784_v12  ;;  %v1321_v0 = vadd.f32 %v1320_v51, %v785_v19 }
0x1074   :  { %v1324_v11 = vmul.f32 0.5, %v1308_v45  ;;  %v1325_v23 = vmul.f32 %v1321_v0, %v2112_v50 }
0x1076   :  { %1659 = vtanh.f32 %v1324_v11 }
0x1077   :  { %1661 = vtanh.f32 %v1325_v23 }
0x1079   :  { %v1309_v44 = vpop.f32.mrf.mxu2  ;;  %v1322_v24 = vpop.f32.mrf.mxu3 }
0x107c   :  { %v1660_v4 = vpop.eup %1659 }
0x107d   :  { %v1662_v1 = vpop.eup %1661  ;;  %v1328_v60 = vmul.f32 0.5, %v1660_v4 }
0x107e   :  { %v1329_v40 = vmul.f32 %v1662_v1, %v2112_v50 }
0x107f   :  { %v1330_v53 = vadd.f32 0.5, %v1328_v60 }
0x1080   :  { %v1331_v25 = vadd.f32 %v1329_v40, %v2116_v5  ;;  %v1373_v5 = vpop.permute.xlu0 %1372 }
0x1081   :  { %v1332_v10 = vmul.f32 %v1330_v53, %v1286_v56 }
0x1082   :  { %v1333_v26 = vmul.f32 %v1331_v25, %v1330_v53 }
0x1084   :  { %1335 = vrot.lane.b32.xlu2 %v1333_v26, %s1666_s5 }
0x108c   :  { %1370 = vrot.lane.b32.xlu2 %v2389_v30, %s1666_s5 }
0x1094   :  { %1376 = vrot.lane.b32.xlu2 %v1288_v3, %s1666_s5 }
0x10de   :  { %v1336_v27 = vpop.permute.xlu2 %1335 }
0x10df   :  { %v1338_v9 = vadd.f32 %v1336_v27, %v1332_v10 }
0x10e1   :  { %1663 = vtanh.f32 %v1338_v9 }
0x10e6   :  { %v1371_v41 = vpop.permute.xlu2 %1370 }
0x10e7   :  { %v1664_v29 = vpop.eup %1663  ;;  %1579 = vmatmul.msk.f32.gmra.mxu1 %vm878_vm6, %v1371_v41 }
0x10e8   :  { %v1340_v50 = vmul.f32 %v1664_v29, %v1331_v25 }
0x10ea   :  { %1378 = vrot.lane.b32.xlu0 %v1340_v50, %s1666_s5 }
0x10ee   :  { %v1377_v30 = vpop.permute.xlu2 %1376 }
0x10ef   :  { %1580 = vmatmul.msk.f32.gmra.mxu1 %vm878_vm6, %v1373_v5 }
0x10f7   :  { %1581 = vmatmul.msk.f32.gmra.mxu1 %vm878_vm6, %v1375_v31 }
0x10ff   :  { %1582 = vmatmul.msk.f32.gmra.mxu1 %vm878_vm6, %v1377_v30 }
0x115c   :  { %v1379_v54 = vpop.permute.xlu0 %1378 }
0x115d   :  { %1583 = vmatmul.msk.f32.gmra.mxu1 %vm878_vm6, %v1379_v54 }
0x1164   :  { %v1427_v39 = vpop.f32.mrf.mxu1 }
0x1165   :  { %v1428_v32 = vadd.f32 %v2462_v37, %v1427_v39 }
0x1167   :  { %1446 = vst [vmem:[%s2543_s13 + $0x20] sm:$0xff] %v1428_v32 }
0x116c   :  { %v1430_v33 = vpop.f32.mrf.mxu1 }
0x116d   :  { %v1431_v17 = vadd.f32 %v2462_v37, %v1430_v33 }
0x116f   :  { %1447 = vst [vmem:[%s2543_s13 + $0x28] sm:$0xff] %v1431_v17 }
0x1174   :  { %v1433_v20 = vpop.f32.mrf.mxu1 }
0x1175   :  { %v1434_v35 = vadd.f32 %v2462_v37, %v1433_v20 }
0x1177   :  { %1448 = vst [vmem:[%s2543_s13 + $0x30] sm:$0xff] %v1434_v35 }
0x117c   :  { %v1436_v21 = vpop.f32.mrf.mxu1 }
0x117d   :  { %v1437_v22 = vadd.f32 %v2462_v37, %v1436_v21 }
0x117f   :  { %1449 = vst [vmem:[%s2543_s13 + $0x38] sm:$0xff] %v1437_v22 }
0x11da   :  { %v1439_v18 = vpop.f32.mrf.mxu1 }
0x11db   :  { %v1440_v43 = vadd.f32 %v2462_v37, %v1439_v18 }
0x11dd   :  { %1450 = vst [vmem:[%s2543_s13 + $0x40] sm:$0xff] %v1440_v43 }

</bundles_post_ra>
